<compile_context>
chip_gen: v5e
topology: v5e:2x2
jax: 0.10.0
libtpu: 0.0.40
codegen_flags: <defaults>
</compile_context>

<pallas_src>
import functools

import jax
import jax.numpy as jnp
from jax.experimental import pallas as pl
from jax.experimental.pallas import tpu as pltpu


def lstm_classifier_kernel(x_ref, w_ih_ref, w_hh_ref, b_ref, w_fc_ref, b_fc_ref,
                           out_ref, gx_ref, *, seq_len, batch_p, hidden_p):
    """Whole LSTM recurrence + fc in one kernel invocation.

    x_ref   : (T*Bp, E)    time-major embedded input, row = t*Bp + b
    w_ih_ref: (E, 4*Hp)    input->gates weights (gate-wise zero padded)
    w_hh_ref: (Hp, 4*Hp)   hidden->gates weights (row + gate-wise padded)
    b_ref   : (1, 4*Hp)    bias_ih + bias_hh (gate-wise padded)
    w_fc_ref: (Hp, Op)     fc weight (row + lane padded)
    b_fc_ref: (1, Op)      fc bias (lane padded)
    out_ref : (Bp, Op)     padded logits
    gx_ref  : (T*Bp, 4*Hp) VMEM scratch: hoisted input projection for all steps
    """
    Bp, Hp = batch_p, hidden_p

    # Hoisted input projection for ALL time steps: one well-filled MXU matmul
    # (M = T*Bp) instead of T tiny ones on the serial recurrence path.
    # Bias is added once here (not re-broadcast per iteration).
    gx_ref[...] = (
        jnp.dot(x_ref[...], w_ih_ref[...], preferred_element_type=jnp.float32)
        + b_ref[...]
    )

    w_hh = w_hh_ref[...]  # hoist recurrent-weight load above the loop

    def step(t, carry):
        h, c = carry
        row = pl.multiple_of(t * Bp, Bp)
        gates = gx_ref[pl.ds(row, Bp), :] + jnp.dot(
            h, w_hh, preferred_element_type=jnp.float32)          # (Bp, 4*Hp)
        # PyTorch gate order i, f, g, o; Hp is a multiple of 128 so every slice
        # is lane-tile aligned (no cross-lane extracts).
        i_g = jax.nn.sigmoid(gates[:, 0 * Hp:1 * Hp])
        f_g = jax.nn.sigmoid(gates[:, 1 * Hp:2 * Hp])
        g_g = jnp.tanh(gates[:, 2 * Hp:3 * Hp])
        o_g = jax.nn.sigmoid(gates[:, 3 * Hp:4 * Hp])
        c_new = f_g * c + i_g * g_g
        h_new = o_g * jnp.tanh(c_new)
        return h_new, c_new

    h0 = jnp.zeros((Bp, Hp), jnp.float32)
    c0 = jnp.zeros((Bp, Hp), jnp.float32)
    h_T, _ = jax.lax.fori_loop(0, seq_len, step, (h0, c0), unroll=True)

    # Fused classifier head; lane-dense (Op = multiple of 128) output store.
    out_ref[...] = (
        jnp.dot(h_T, w_fc_ref[...], preferred_element_type=jnp.float32)
        + b_fc_ref[...]
    )


def _round_up(x, m):
    return ((x + m - 1) // m) * m


def _pad_gate_cols(w, h, hp):
    """(..., 4*h) -> (..., 4*hp), zero-padding each of the 4 gate blocks."""
    lead = w.shape[:-1]
    w4 = w.reshape(lead + (4, h))
    w4 = jnp.pad(w4, [(0, 0)] * len(lead) + [(0, 0), (0, hp - h)])
    return w4.reshape(lead + (4 * hp,))


def text_classifier_forward(tokens, params):
    """tokens: int32 (B, T) -> logits float32 (B, 2)."""
    emb_table = params["embedding"]                  # (V, E), row 0 zero (padding_idx=0)
    w_ih, w_hh = params["w_ih"], params["w_hh"]      # (E, 4H), (H, 4H)
    bias = params["bias"]                            # (1, 4H)
    w_fc, b_fc = params["w_fc"], params["b_fc"]      # (H, O), (1, O)

    B, T = tokens.shape
    E = emb_table.shape[1]
    H = w_hh.shape[0]
    O = w_fc.shape[1]

    Bp = _round_up(B, 8)       # f32 sublane multiple -> dense sublane traffic
    Hp = _round_up(H, 128)     # lane multiple -> lane-aligned gate slices
    Op = _round_up(O, 128)     # lane-dense logits store

    # Embedding gather + time-major layout + batch pad (tiny XLA glue).
    embedded = jnp.take(emb_table, tokens, axis=0)            # (B, T, E)
    x = jnp.transpose(embedded, (1, 0, 2))                    # (T, B, E)
    x = jnp.pad(x, ((0, 0), (0, Bp - B), (0, 0)))             # (T, Bp, E)
    x2d = x.reshape(T * Bp, E).astype(jnp.float32)            # row = t*Bp + b

    # Zero-padded parameters: padded hidden lanes stay exactly 0 through the
    # recurrence and contribute nothing to real gates or logits.
    w_ih_p = _pad_gate_cols(w_ih, H, Hp)                                   # (E, 4Hp)
    w_hh_p = _pad_gate_cols(jnp.pad(w_hh, ((0, Hp - H), (0, 0))), H, Hp)   # (Hp, 4Hp)
    bias_p = _pad_gate_cols(bias, H, Hp)                                   # (1, 4Hp)
    w_fc_p = jnp.pad(w_fc, ((0, Hp - H), (0, Op - O)))                     # (Hp, Op)
    b_fc_p = jnp.pad(b_fc, ((0, 0), (0, Op - O)))                          # (1, Op)

    kernel = functools.partial(
        lstm_classifier_kernel, seq_len=T, batch_p=Bp, hidden_p=Hp)

    out_p = pl.pallas_call(
        kernel,
        out_shape=jax.ShapeDtypeStruct((Bp, Op), jnp.float32),
        grid_spec=pltpu.PrefetchScalarGridSpec(
            num_scalar_prefetch=0,
            grid=(1,),                                          # single invocation
            in_specs=[
                pl.BlockSpec((T * Bp, E), lambda i: (0, 0)),    # x (time-major, whole)
                pl.BlockSpec((E, 4 * Hp), lambda i: (0, 0)),    # w_ih
                pl.BlockSpec((Hp, 4 * Hp), lambda i: (0, 0)),   # w_hh
                pl.BlockSpec((1, 4 * Hp), lambda i: (0, 0)),    # bias
                pl.BlockSpec((Hp, Op), lambda i: (0, 0)),       # w_fc
                pl.BlockSpec((1, Op), lambda i: (0, 0)),        # b_fc
            ],
            out_specs=pl.BlockSpec((Bp, Op), lambda i: (0, 0)),
            scratch_shapes=[
                pltpu.VMEM((T * Bp, 4 * Hp), jnp.float32),      # hoisted input proj
            ],
        ),
        compiler_params=pltpu.CompilerParams(
            dimension_semantics=("arbitrary",),
        ),
    )(x2d, w_ih_p, w_hh_p, bias_p, w_fc_p, b_fc_p)

    return out_p[:B, :O]


def init_params(key, vocab_size, embedding_dim, hidden_dim, output_dim=2):
    k_emb, k_ih, k_hh, k_bih, k_bhh, k_fc, k_bfc = jax.random.split(key, 7)
    scale = 1.0 / jnp.sqrt(hidden_dim)

    emb = 0.1 * jax.random.normal(k_emb, (vocab_size, embedding_dim), jnp.float32)
    emb = emb.at[0].set(0.0)  # padding_idx=0

    # PyTorch stores weight_ih_l0 as (4H, E) / weight_hh_l0 as (4H, H);
    # we keep them pre-transposed for right-multiplication inside the kernel.
    w_ih = jax.random.uniform(k_ih, (embedding_dim, 4 * hidden_dim),
                              jnp.float32, -scale, scale)
    w_hh = jax.random.uniform(k_hh, (hidden_dim, 4 * hidden_dim),
                              jnp.float32, -scale, scale)
    b_ih = jax.random.uniform(k_bih, (4 * hidden_dim,), jnp.float32, -scale, scale)
    b_hh = jax.random.uniform(k_bhh, (4 * hidden_dim,), jnp.float32, -scale, scale)
    bias = (b_ih + b_hh).reshape(1, 4 * hidden_dim)

    w_fc = jax.random.uniform(k_fc, (hidden_dim, output_dim),
                              jnp.float32, -scale, scale)
    b_fc = jax.random.uniform(k_bfc, (1, output_dim), jnp.float32, -scale, scale)

    return {"embedding": emb, "w_ih": w_ih, "w_hh": w_hh, "bias": bias,
            "w_fc": w_fc, "b_fc": b_fc}


def _reference_forward(tokens, params):
    """Pure-JAX reference (unpadded) with identical PyTorch LSTM semantics."""
    emb = jnp.take(params["embedding"], tokens, axis=0)       # (B, T, E)
    H = params["w_hh"].shape[0]
    B, T = tokens.shape
    h = jnp.zeros((B, H), jnp.float32)
    c = jnp.zeros((B, H), jnp.float32)
    for t in range(T):
        g = emb[:, t, :] @ params["w_ih"] + h @ params["w_hh"] + params["bias"]
        i = jax.nn.sigmoid(g[:, 0 * H:1 * H])
        f = jax.nn.sigmoid(g[:, 1 * H:2 * H])
        gg = jnp.tanh(g[:, 2 * H:3 * H])
        o = jax.nn.sigmoid(g[:, 3 * H:4 * H])
        c = f * c + i * gg
        h = o * jnp.tanh(c)
    return h @ params["w_fc"] + params["b_fc"]


if __name__ == "__main__":
    # Small shapes consistent with the module: batch=2, seq=8,
    # vocab_size=50, embedding_dim=16, hidden_dim=32, output_dim=2.
    B, T = 2, 8
    VOCAB, EMB, HID = 50, 16, 32

    key = jax.random.PRNGKey(0)
    k_params, k_tok = jax.random.split(key)

    params = init_params(k_params, VOCAB, EMB, HID)
    tokens = jax.random.randint(k_tok, (B, T), 0, VOCAB, dtype=jnp.int32)

    logits = text_classifier_forward(tokens, params)
    jax.block_until_ready(logits)
    assert logits.shape == (B, 2) and logits.dtype == jnp.float32

    ref = _reference_forward(tokens, params)
    assert jnp.allclose(logits, ref, atol=1e-3, rtol=1e-3), (logits, ref)

    print("KERNEL_OK")
</pallas_src>

<mosaic_0001>
module attributes {stable_mosaic.version = 11 : i64} {
  func.func @lstm_classifier_kernel(%arg0: i32, %arg1: memref<64x16xf32, #tpu.memory_space<vmem>>, %arg2: memref<16x512xf32, #tpu.memory_space<vmem>>, %arg3: memref<128x512xf32, #tpu.memory_space<vmem>>, %arg4: memref<1x512xf32, #tpu.memory_space<vmem>>, %arg5: memref<128x128xf32, #tpu.memory_space<vmem>>, %arg6: memref<1x128xf32, #tpu.memory_space<vmem>>, %arg7: memref<8x128xf32, #tpu.memory_space<vmem>>, %arg8: memref<64x512xf32, #tpu.memory_space<vmem>>) attributes {dimension_semantics = [#tpu.dimension_semantics<arbitrary>], iteration_bounds = array<i64: 1>, scalar_prefetch = 0 : i64, scratch_operands = 1 : i64, tpu.core_type = #tpu.core_type<tc>, window_params = [{pipeline_mode = #tpu.pipeline_mode<synchronous>, transform_indices = @transform_0, window_bounds = array<i64: 64, 16>}, {pipeline_mode = #tpu.pipeline_mode<synchronous>, transform_indices = @transform_1, window_bounds = array<i64: 16, 512>}, {pipeline_mode = #tpu.pipeline_mode<synchronous>, transform_indices = @transform_2, window_bounds = array<i64: 128, 512>}, {pipeline_mode = #tpu.pipeline_mode<synchronous>, transform_indices = @transform_3, window_bounds = array<i64: 1, 512>}, {pipeline_mode = #tpu.pipeline_mode<synchronous>, transform_indices = @transform_4, window_bounds = array<i64: 128, 128>}, {pipeline_mode = #tpu.pipeline_mode<synchronous>, transform_indices = @transform_5, window_bounds = array<i64: 1, 128>}, {pipeline_mode = #tpu.pipeline_mode<synchronous>, transform_indices = @transform_6, window_bounds = array<i64: 8, 128>}]} {
    %c0 = arith.constant 0 : index
    %c0_0 = arith.constant 0 : index
    %0 = vector.load %arg1[%c0, %c0_0] : memref<64x16xf32, #tpu.memory_space<vmem>>, vector<64x16xf32>
    %c0_1 = arith.constant 0 : index
    %c0_2 = arith.constant 0 : index
    %1 = vector.load %arg2[%c0_1, %c0_2] : memref<16x512xf32, #tpu.memory_space<vmem>>, vector<16x512xf32>
    %cst = arith.constant dense<0.000000e+00> : vector<64x512xf32>
    %2 = tpu.matmul %0, %1, %cst {dimension_numbers = #tpu.dot_dimension_numbers<[1], [0], [0], [1], [0, 0, 1, 1], [], []>} : vector<64x16xf32>, vector<16x512xf32>, vector<64x512xf32> -> vector<64x512xf32>
    %c0_3 = arith.constant 0 : index
    %c0_4 = arith.constant 0 : index
    %3 = vector.load %arg4[%c0_3, %c0_4] : memref<1x512xf32, #tpu.memory_space<vmem>>, vector<1x512xf32>
    %4 = vector.broadcast %3 : vector<1x512xf32> to vector<64x512xf32>
    %5 = arith.addf %2, %4 : vector<64x512xf32>
    %c0_5 = arith.constant 0 : index
    %c0_6 = arith.constant 0 : index
    %6 = vector.load %arg8[%c0_5, %c0_6] : memref<64x512xf32, #tpu.memory_space<vmem>>, vector<64x512xf32>
    tpu.vector_store %arg8[%c0_5, %c0_6], %5 {strides = array<i32>} : memref<64x512xf32, #tpu.memory_space<vmem>>, vector<64x512xf32>,
    %c0_7 = arith.constant 0 : index
    %c0_8 = arith.constant 0 : index
    %7 = vector.load %arg3[%c0_7, %c0_8] : memref<128x512xf32, #tpu.memory_space<vmem>>, vector<128x512xf32>
    %cst_9 = arith.constant 0.000000e+00 : f32
    %8 = vector.broadcast %cst_9 : f32 to vector<8x128xf32>
    %cst_10 = arith.constant 0.000000e+00 : f32
    %9 = vector.broadcast %cst_10 : f32 to vector<8x128xf32>
    %c0_i32 = arith.constant 0 : i32
    %c8_i32 = arith.constant 8 : i32
    %10 = arith.muli %c0_i32, %c8_i32 : i32
    %11 = tpu.assume_multiple %10, 8 : i32
    %12 = arith.index_cast %11 : i32 to index
    %c0_11 = arith.constant 0 : index
    %13 = vector.load %arg8[%12, %c0_11] : memref<64x512xf32, #tpu.memory_space<vmem>>, vector<8x512xf32>
    %cst_12 = arith.constant dense<0.000000e+00> : vector<8x512xf32>
    %14 = tpu.matmul %8, %7, %cst_12 {dimension_numbers = #tpu.dot_dimension_numbers<[1], [0], [0], [1], [0, 0, 1, 1], [], []>} : vector<8x128xf32>, vector<128x512xf32>, vector<8x512xf32> -> vector<8x512xf32>
    %15 = arith.addf %13, %14 : vector<8x512xf32>
    %16 = vector.extract_strided_slice %15 {offsets = [0, 0], sizes = [8, 128], strides = [1, 1]} : vector<8x512xf32> to vector<8x128xf32>
    %17 = arith.negf %16 : vector<8x128xf32>
    %18 = math.exp %17 : vector<8x128xf32>
    %cst_13 = arith.constant 1.000000e+00 : f32
    %19 = vector.broadcast %cst_13 : f32 to vector<8x128xf32>
    %20 = arith.addf %19, %18 : vector<8x128xf32>
    %21 = arith.divf %19, %20 : vector<8x128xf32>
    %22 = vector.extract_strided_slice %15 {offsets = [0, 128], sizes = [8, 128], strides = [1, 1]} : vector<8x512xf32> to vector<8x128xf32>
    %23 = arith.negf %22 : vector<8x128xf32>
    %24 = math.exp %23 : vector<8x128xf32>
    %cst_14 = arith.constant 1.000000e+00 : f32
    %25 = vector.broadcast %cst_14 : f32 to vector<8x128xf32>
    %26 = arith.addf %25, %24 : vector<8x128xf32>
    %27 = arith.divf %25, %26 : vector<8x128xf32>
    %28 = vector.extract_strided_slice %15 {offsets = [0, 256], sizes = [8, 128], strides = [1, 1]} : vector<8x512xf32> to vector<8x128xf32>
    %29 = math.tanh %28 : vector<8x128xf32>
    %30 = vector.extract_strided_slice %15 {offsets = [0, 384], sizes = [8, 128], strides = [1, 1]} : vector<8x512xf32> to vector<8x128xf32>
    %31 = arith.negf %30 : vector<8x128xf32>
    %32 = math.exp %31 : vector<8x128xf32>
    %cst_15 = arith.constant 1.000000e+00 : f32
    %33 = vector.broadcast %cst_15 : f32 to vector<8x128xf32>
    %34 = arith.addf %33, %32 : vector<8x128xf32>
    %35 = arith.divf %33, %34 : vector<8x128xf32>
    %36 = arith.mulf %27, %9 : vector<8x128xf32>
    %37 = arith.mulf %21, %29 : vector<8x128xf32>
    %38 = arith.addf %36, %37 : vector<8x128xf32>
    %39 = math.tanh %38 : vector<8x128xf32>
    %40 = arith.mulf %35, %39 : vector<8x128xf32>
    %c1_i32 = arith.constant 1 : i32
    %c8_i32_16 = arith.constant 8 : i32
    %41 = arith.muli %c1_i32, %c8_i32_16 : i32
    %42 = tpu.assume_multiple %41, 8 : i32
    %43 = arith.index_cast %42 : i32 to index
    %c0_17 = arith.constant 0 : index
    %44 = vector.load %arg8[%43, %c0_17] : memref<64x512xf32, #tpu.memory_space<vmem>>, vector<8x512xf32>
    %cst_18 = arith.constant dense<0.000000e+00> : vector<8x512xf32>
    %45 = tpu.matmul %40, %7, %cst_18 {dimension_numbers = #tpu.dot_dimension_numbers<[1], [0], [0], [1], [0, 0, 1, 1], [], []>} : vector<8x128xf32>, vector<128x512xf32>, vector<8x512xf32> -> vector<8x512xf32>
    %46 = arith.addf %44, %45 : vector<8x512xf32>
    %47 = vector.extract_strided_slice %46 {offsets = [0, 0], sizes = [8, 128], strides = [1, 1]} : vector<8x512xf32> to vector<8x128xf32>
    %48 = arith.negf %47 : vector<8x128xf32>
    %49 = math.exp %48 : vector<8x128xf32>
    %cst_19 = arith.constant 1.000000e+00 : f32
    %50 = vector.broadcast %cst_19 : f32 to vector<8x128xf32>
    %51 = arith.addf %50, %49 : vector<8x128xf32>
    %52 = arith.divf %50, %51 : vector<8x128xf32>
    %53 = vector.extract_strided_slice %46 {offsets = [0, 128], sizes = [8, 128], strides = [1, 1]} : vector<8x512xf32> to vector<8x128xf32>
    %54 = arith.negf %53 : vector<8x128xf32>
    %55 = math.exp %54 : vector<8x128xf32>
    %cst_20 = arith.constant 1.000000e+00 : f32
    %56 = vector.broadcast %cst_20 : f32 to vector<8x128xf32>
    %57 = arith.addf %56, %55 : vector<8x128xf32>
    %58 = arith.divf %56, %57 : vector<8x128xf32>
    %59 = vector.extract_strided_slice %46 {offsets = [0, 256], sizes = [8, 128], strides = [1, 1]} : vector<8x512xf32> to vector<8x128xf32>
    %60 = math.tanh %59 : vector<8x128xf32>
    %61 = vector.extract_strided_slice %46 {offsets = [0, 384], sizes = [8, 128], strides = [1, 1]} : vector<8x512xf32> to vector<8x128xf32>
    %62 = arith.negf %61 : vector<8x128xf32>
    %63 = math.exp %62 : vector<8x128xf32>
    %cst_21 = arith.constant 1.000000e+00 : f32
    %64 = vector.broadcast %cst_21 : f32 to vector<8x128xf32>
    %65 = arith.addf %64, %63 : vector<8x128xf32>
    %66 = arith.divf %64, %65 : vector<8x128xf32>
    %67 = arith.mulf %58, %38 : vector<8x128xf32>
    %68 = arith.mulf %52, %60 : vector<8x128xf32>
    %69 = arith.addf %67, %68 : vector<8x128xf32>
    %70 = math.tanh %69 : vector<8x128xf32>
    %71 = arith.mulf %66, %70 : vector<8x128xf32>
    %c2_i32 = arith.constant 2 : i32
    %c8_i32_22 = arith.constant 8 : i32
    %72 = arith.muli %c2_i32, %c8_i32_22 : i32
    %73 = tpu.assume_multiple %72, 8 : i32
    %74 = arith.index_cast %73 : i32 to index
    %c0_23 = arith.constant 0 : index
    %75 = vector.load %arg8[%74, %c0_23] : memref<64x512xf32, #tpu.memory_space<vmem>>, vector<8x512xf32>
    %cst_24 = arith.constant dense<0.000000e+00> : vector<8x512xf32>
    %76 = tpu.matmul %71, %7, %cst_24 {dimension_numbers = #tpu.dot_dimension_numbers<[1], [0], [0], [1], [0, 0, 1, 1], [], []>} : vector<8x128xf32>, vector<128x512xf32>, vector<8x512xf32> -> vector<8x512xf32>
    %77 = arith.addf %75, %76 : vector<8x512xf32>
    %78 = vector.extract_strided_slice %77 {offsets = [0, 0], sizes = [8, 128], strides = [1, 1]} : vector<8x512xf32> to vector<8x128xf32>
    %79 = arith.negf %78 : vector<8x128xf32>
    %80 = math.exp %79 : vector<8x128xf32>
    %cst_25 = arith.constant 1.000000e+00 : f32
    %81 = vector.broadcast %cst_25 : f32 to vector<8x128xf32>
    %82 = arith.addf %81, %80 : vector<8x128xf32>
    %83 = arith.divf %81, %82 : vector<8x128xf32>
    %84 = vector.extract_strided_slice %77 {offsets = [0, 128], sizes = [8, 128], strides = [1, 1]} : vector<8x512xf32> to vector<8x128xf32>
    %85 = arith.negf %84 : vector<8x128xf32>
    %86 = math.exp %85 : vector<8x128xf32>
    %cst_26 = arith.constant 1.000000e+00 : f32
    %87 = vector.broadcast %cst_26 : f32 to vector<8x128xf32>
    %88 = arith.addf %87, %86 : vector<8x128xf32>
    %89 = arith.divf %87, %88 : vector<8x128xf32>
    %90 = vector.extract_strided_slice %77 {offsets = [0, 256], sizes = [8, 128], strides = [1, 1]} : vector<8x512xf32> to vector<8x128xf32>
    %91 = math.tanh %90 : vector<8x128xf32>
    %92 = vector.extract_strided_slice %77 {offsets = [0, 384], sizes = [8, 128], strides = [1, 1]} : vector<8x512xf32> to vector<8x128xf32>
    %93 = arith.negf %92 : vector<8x128xf32>
    %94 = math.exp %93 : vector<8x128xf32>
    %cst_27 = arith.constant 1.000000e+00 : f32
    %95 = vector.broadcast %cst_27 : f32 to vector<8x128xf32>
    %96 = arith.addf %95, %94 : vector<8x128xf32>
    %97 = arith.divf %95, %96 : vector<8x128xf32>
    %98 = arith.mulf %89, %69 : vector<8x128xf32>
    %99 = arith.mulf %83, %91 : vector<8x128xf32>
    %100 = arith.addf %98, %99 : vector<8x128xf32>
    %101 = math.tanh %100 : vector<8x128xf32>
    %102 = arith.mulf %97, %101 : vector<8x128xf32>
    %c3_i32 = arith.constant 3 : i32
    %c8_i32_28 = arith.constant 8 : i32
    %103 = arith.muli %c3_i32, %c8_i32_28 : i32
    %104 = tpu.assume_multiple %103, 8 : i32
    %105 = arith.index_cast %104 : i32 to index
    %c0_29 = arith.constant 0 : index
    %106 = vector.load %arg8[%105, %c0_29] : memref<64x512xf32, #tpu.memory_space<vmem>>, vector<8x512xf32>
    %cst_30 = arith.constant dense<0.000000e+00> : vector<8x512xf32>
    %107 = tpu.matmul %102, %7, %cst_30 {dimension_numbers = #tpu.dot_dimension_numbers<[1], [0], [0], [1], [0, 0, 1, 1], [], []>} : vector<8x128xf32>, vector<128x512xf32>, vector<8x512xf32> -> vector<8x512xf32>
    %108 = arith.addf %106, %107 : vector<8x512xf32>
    %109 = vector.extract_strided_slice %108 {offsets = [0, 0], sizes = [8, 128], strides = [1, 1]} : vector<8x512xf32> to vector<8x128xf32>
    %110 = arith.negf %109 : vector<8x128xf32>
    %111 = math.exp %110 : vector<8x128xf32>
    %cst_31 = arith.constant 1.000000e+00 : f32
    %112 = vector.broadcast %cst_31 : f32 to vector<8x128xf32>
    %113 = arith.addf %112, %111 : vector<8x128xf32>
    %114 = arith.divf %112, %113 : vector<8x128xf32>
    %115 = vector.extract_strided_slice %108 {offsets = [0, 128], sizes = [8, 128], strides = [1, 1]} : vector<8x512xf32> to vector<8x128xf32>
    %116 = arith.negf %115 : vector<8x128xf32>
    %117 = math.exp %116 : vector<8x128xf32>
    %cst_32 = arith.constant 1.000000e+00 : f32
    %118 = vector.broadcast %cst_32 : f32 to vector<8x128xf32>
    %119 = arith.addf %118, %117 : vector<8x128xf32>
    %120 = arith.divf %118, %119 : vector<8x128xf32>
    %121 = vector.extract_strided_slice %108 {offsets = [0, 256], sizes = [8, 128], strides = [1, 1]} : vector<8x512xf32> to vector<8x128xf32>
    %122 = math.tanh %121 : vector<8x128xf32>
    %123 = vector.extract_strided_slice %108 {offsets = [0, 384], sizes = [8, 128], strides = [1, 1]} : vector<8x512xf32> to vector<8x128xf32>
    %124 = arith.negf %123 : vector<8x128xf32>
    %125 = math.exp %124 : vector<8x128xf32>
    %cst_33 = arith.constant 1.000000e+00 : f32
    %126 = vector.broadcast %cst_33 : f32 to vector<8x128xf32>
    %127 = arith.addf %126, %125 : vector<8x128xf32>
    %128 = arith.divf %126, %127 : vector<8x128xf32>
    %129 = arith.mulf %120, %100 : vector<8x128xf32>
    %130 = arith.mulf %114, %122 : vector<8x128xf32>
    %131 = arith.addf %129, %130 : vector<8x128xf32>
    %132 = math.tanh %131 : vector<8x128xf32>
    %133 = arith.mulf %128, %132 : vector<8x128xf32>
    %c4_i32 = arith.constant 4 : i32
    %c8_i32_34 = arith.constant 8 : i32
    %134 = arith.muli %c4_i32, %c8_i32_34 : i32
    %135 = tpu.assume_multiple %134, 8 : i32
    %136 = arith.index_cast %135 : i32 to index
    %c0_35 = arith.constant 0 : index
    %137 = vector.load %arg8[%136, %c0_35] : memref<64x512xf32, #tpu.memory_space<vmem>>, vector<8x512xf32>
    %cst_36 = arith.constant dense<0.000000e+00> : vector<8x512xf32>
    %138 = tpu.matmul %133, %7, %cst_36 {dimension_numbers = #tpu.dot_dimension_numbers<[1], [0], [0], [1], [0, 0, 1, 1], [], []>} : vector<8x128xf32>, vector<128x512xf32>, vector<8x512xf32> -> vector<8x512xf32>
    %139 = arith.addf %137, %138 : vector<8x512xf32>
    %140 = vector.extract_strided_slice %139 {offsets = [0, 0], sizes = [8, 128], strides = [1, 1]} : vector<8x512xf32> to vector<8x128xf32>
    %141 = arith.negf %140 : vector<8x128xf32>
    %142 = math.exp %141 : vector<8x128xf32>
    %cst_37 = arith.constant 1.000000e+00 : f32
    %143 = vector.broadcast %cst_37 : f32 to vector<8x128xf32>
    %144 = arith.addf %143, %142 : vector<8x128xf32>
    %145 = arith.divf %143, %144 : vector<8x128xf32>
    %146 = vector.extract_strided_slice %139 {offsets = [0, 128], sizes = [8, 128], strides = [1, 1]} : vector<8x512xf32> to vector<8x128xf32>
    %147 = arith.negf %146 : vector<8x128xf32>
    %148 = math.exp %147 : vector<8x128xf32>
    %cst_38 = arith.constant 1.000000e+00 : f32
    %149 = vector.broadcast %cst_38 : f32 to vector<8x128xf32>
    %150 = arith.addf %149, %148 : vector<8x128xf32>
    %151 = arith.divf %149, %150 : vector<8x128xf32>
    %152 = vector.extract_strided_slice %139 {offsets = [0, 256], sizes = [8, 128], strides = [1, 1]} : vector<8x512xf32> to vector<8x128xf32>
    %153 = math.tanh %152 : vector<8x128xf32>
    %154 = vector.extract_strided_slice %139 {offsets = [0, 384], sizes = [8, 128], strides = [1, 1]} : vector<8x512xf32> to vector<8x128xf32>
    %155 = arith.negf %154 : vector<8x128xf32>
    %156 = math.exp %155 : vector<8x128xf32>
    %cst_39 = arith.constant 1.000000e+00 : f32
    %157 = vector.broadcast %cst_39 : f32 to vector<8x128xf32>
    %158 = arith.addf %157, %156 : vector<8x128xf32>
    %159 = arith.divf %157, %158 : vector<8x128xf32>
    %160 = arith.mulf %151, %131 : vector<8x128xf32>
    %161 = arith.mulf %145, %153 : vector<8x128xf32>
    %162 = arith.addf %160, %161 : vector<8x128xf32>
    %163 = math.tanh %162 : vector<8x128xf32>
    %164 = arith.mulf %159, %163 : vector<8x128xf32>
    %c5_i32 = arith.constant 5 : i32
    %c8_i32_40 = arith.constant 8 : i32
    %165 = arith.muli %c5_i32, %c8_i32_40 : i32
    %166 = tpu.assume_multiple %165, 8 : i32
    %167 = arith.index_cast %166 : i32 to index
    %c0_41 = arith.constant 0 : index
    %168 = vector.load %arg8[%167, %c0_41] : memref<64x512xf32, #tpu.memory_space<vmem>>, vector<8x512xf32>
    %cst_42 = arith.constant dense<0.000000e+00> : vector<8x512xf32>
    %169 = tpu.matmul %164, %7, %cst_42 {dimension_numbers = #tpu.dot_dimension_numbers<[1], [0], [0], [1], [0, 0, 1, 1], [], []>} : vector<8x128xf32>, vector<128x512xf32>, vector<8x512xf32> -> vector<8x512xf32>
    %170 = arith.addf %168, %169 : vector<8x512xf32>
    %171 = vector.extract_strided_slice %170 {offsets = [0, 0], sizes = [8, 128], strides = [1, 1]} : vector<8x512xf32> to vector<8x128xf32>
    %172 = arith.negf %171 : vector<8x128xf32>
    %173 = math.exp %172 : vector<8x128xf32>
    %cst_43 = arith.constant 1.000000e+00 : f32
    %174 = vector.broadcast %cst_43 : f32 to vector<8x128xf32>
    %175 = arith.addf %174, %173 : vector<8x128xf32>
    %176 = arith.divf %174, %175 : vector<8x128xf32>
    %177 = vector.extract_strided_slice %170 {offsets = [0, 128], sizes = [8, 128], strides = [1, 1]} : vector<8x512xf32> to vector<8x128xf32>
    %178 = arith.negf %177 : vector<8x128xf32>
    %179 = math.exp %178 : vector<8x128xf32>
    %cst_44 = arith.constant 1.000000e+00 : f32
    %180 = vector.broadcast %cst_44 : f32 to vector<8x128xf32>
    %181 = arith.addf %180, %179 : vector<8x128xf32>
    %182 = arith.divf %180, %181 : vector<8x128xf32>
    %183 = vector.extract_strided_slice %170 {offsets = [0, 256], sizes = [8, 128], strides = [1, 1]} : vector<8x512xf32> to vector<8x128xf32>
    %184 = math.tanh %183 : vector<8x128xf32>
    %185 = vector.extract_strided_slice %170 {offsets = [0, 384], sizes = [8, 128], strides = [1, 1]} : vector<8x512xf32> to vector<8x128xf32>
    %186 = arith.negf %185 : vector<8x128xf32>
    %187 = math.exp %186 : vector<8x128xf32>
    %cst_45 = arith.constant 1.000000e+00 : f32
    %188 = vector.broadcast %cst_45 : f32 to vector<8x128xf32>
    %189 = arith.addf %188, %187 : vector<8x128xf32>
    %190 = arith.divf %188, %189 : vector<8x128xf32>
    %191 = arith.mulf %182, %162 : vector<8x128xf32>
    %192 = arith.mulf %176, %184 : vector<8x128xf32>
    %193 = arith.addf %191, %192 : vector<8x128xf32>
    %194 = math.tanh %193 : vector<8x128xf32>
    %195 = arith.mulf %190, %194 : vector<8x128xf32>
    %c6_i32 = arith.constant 6 : i32
    %c8_i32_46 = arith.constant 8 : i32
    %196 = arith.muli %c6_i32, %c8_i32_46 : i32
    %197 = tpu.assume_multiple %196, 8 : i32
    %198 = arith.index_cast %197 : i32 to index
    %c0_47 = arith.constant 0 : index
    %199 = vector.load %arg8[%198, %c0_47] : memref<64x512xf32, #tpu.memory_space<vmem>>, vector<8x512xf32>
    %cst_48 = arith.constant dense<0.000000e+00> : vector<8x512xf32>
    %200 = tpu.matmul %195, %7, %cst_48 {dimension_numbers = #tpu.dot_dimension_numbers<[1], [0], [0], [1], [0, 0, 1, 1], [], []>} : vector<8x128xf32>, vector<128x512xf32>, vector<8x512xf32> -> vector<8x512xf32>
    %201 = arith.addf %199, %200 : vector<8x512xf32>
    %202 = vector.extract_strided_slice %201 {offsets = [0, 0], sizes = [8, 128], strides = [1, 1]} : vector<8x512xf32> to vector<8x128xf32>
    %203 = arith.negf %202 : vector<8x128xf32>
    %204 = math.exp %203 : vector<8x128xf32>
    %cst_49 = arith.constant 1.000000e+00 : f32
    %205 = vector.broadcast %cst_49 : f32 to vector<8x128xf32>
    %206 = arith.addf %205, %204 : vector<8x128xf32>
    %207 = arith.divf %205, %206 : vector<8x128xf32>
    %208 = vector.extract_strided_slice %201 {offsets = [0, 128], sizes = [8, 128], strides = [1, 1]} : vector<8x512xf32> to vector<8x128xf32>
    %209 = arith.negf %208 : vector<8x128xf32>
    %210 = math.exp %209 : vector<8x128xf32>
    %cst_50 = arith.constant 1.000000e+00 : f32
    %211 = vector.broadcast %cst_50 : f32 to vector<8x128xf32>
    %212 = arith.addf %211, %210 : vector<8x128xf32>
    %213 = arith.divf %211, %212 : vector<8x128xf32>
    %214 = vector.extract_strided_slice %201 {offsets = [0, 256], sizes = [8, 128], strides = [1, 1]} : vector<8x512xf32> to vector<8x128xf32>
    %215 = math.tanh %214 : vector<8x128xf32>
    %216 = vector.extract_strided_slice %201 {offsets = [0, 384], sizes = [8, 128], strides = [1, 1]} : vector<8x512xf32> to vector<8x128xf32>
    %217 = arith.negf %216 : vector<8x128xf32>
    %218 = math.exp %217 : vector<8x128xf32>
    %cst_51 = arith.constant 1.000000e+00 : f32
    %219 = vector.broadcast %cst_51 : f32 to vector<8x128xf32>
    %220 = arith.addf %219, %218 : vector<8x128xf32>
    %221 = arith.divf %219, %220 : vector<8x128xf32>
    %222 = arith.mulf %213, %193 : vector<8x128xf32>
    %223 = arith.mulf %207, %215 : vector<8x128xf32>
    %224 = arith.addf %222, %223 : vector<8x128xf32>
    %225 = math.tanh %224 : vector<8x128xf32>
    %226 = arith.mulf %221, %225 : vector<8x128xf32>
    %c7_i32 = arith.constant 7 : i32
    %c8_i32_52 = arith.constant 8 : i32
    %227 = arith.muli %c7_i32, %c8_i32_52 : i32
    %228 = tpu.assume_multiple %227, 8 : i32
    %229 = arith.index_cast %228 : i32 to index
    %c0_53 = arith.constant 0 : index
    %230 = vector.load %arg8[%229, %c0_53] : memref<64x512xf32, #tpu.memory_space<vmem>>, vector<8x512xf32>
    %cst_54 = arith.constant dense<0.000000e+00> : vector<8x512xf32>
    %231 = tpu.matmul %226, %7, %cst_54 {dimension_numbers = #tpu.dot_dimension_numbers<[1], [0], [0], [1], [0, 0, 1, 1], [], []>} : vector<8x128xf32>, vector<128x512xf32>, vector<8x512xf32> -> vector<8x512xf32>
    %232 = arith.addf %230, %231 : vector<8x512xf32>
    %233 = vector.extract_strided_slice %232 {offsets = [0, 0], sizes = [8, 128], strides = [1, 1]} : vector<8x512xf32> to vector<8x128xf32>
    %234 = arith.negf %233 : vector<8x128xf32>
    %235 = math.exp %234 : vector<8x128xf32>
    %cst_55 = arith.constant 1.000000e+00 : f32
    %236 = vector.broadcast %cst_55 : f32 to vector<8x128xf32>
    %237 = arith.addf %236, %235 : vector<8x128xf32>
    %238 = arith.divf %236, %237 : vector<8x128xf32>
    %239 = vector.extract_strided_slice %232 {offsets = [0, 128], sizes = [8, 128], strides = [1, 1]} : vector<8x512xf32> to vector<8x128xf32>
    %240 = arith.negf %239 : vector<8x128xf32>
    %241 = math.exp %240 : vector<8x128xf32>
    %cst_56 = arith.constant 1.000000e+00 : f32
    %242 = vector.broadcast %cst_56 : f32 to vector<8x128xf32>
    %243 = arith.addf %242, %241 : vector<8x128xf32>
    %244 = arith.divf %242, %243 : vector<8x128xf32>
    %245 = vector.extract_strided_slice %232 {offsets = [0, 256], sizes = [8, 128], strides = [1, 1]} : vector<8x512xf32> to vector<8x128xf32>
    %246 = math.tanh %245 : vector<8x128xf32>
    %247 = vector.extract_strided_slice %232 {offsets = [0, 384], sizes = [8, 128], strides = [1, 1]} : vector<8x512xf32> to vector<8x128xf32>
    %248 = arith.negf %247 : vector<8x128xf32>
    %249 = math.exp %248 : vector<8x128xf32>
    %cst_57 = arith.constant 1.000000e+00 : f32
    %250 = vector.broadcast %cst_57 : f32 to vector<8x128xf32>
    %251 = arith.addf %250, %249 : vector<8x128xf32>
    %252 = arith.divf %250, %251 : vector<8x128xf32>
    %253 = arith.mulf %244, %224 : vector<8x128xf32>
    %254 = arith.mulf %238, %246 : vector<8x128xf32>
    %255 = arith.addf %253, %254 : vector<8x128xf32>
    %256 = math.tanh %255 : vector<8x128xf32>
    %257 = arith.mulf %252, %256 : vector<8x128xf32>
    %c8_i32_58 = arith.constant 8 : i32
    %c0_59 = arith.constant 0 : index
    %c0_60 = arith.constant 0 : index
    %258 = vector.load %arg5[%c0_59, %c0_60] : memref<128x128xf32, #tpu.memory_space<vmem>>, vector<128x128xf32>
    %cst_61 = arith.constant dense<0.000000e+00> : vector<8x128xf32>
    %259 = tpu.matmul %257, %258, %cst_61 {dimension_numbers = #tpu.dot_dimension_numbers<[1], [0], [0], [1], [0, 0, 1, 1], [], []>} : vector<8x128xf32>, vector<128x128xf32>, vector<8x128xf32> -> vector<8x128xf32>
    %c0_62 = arith.constant 0 : index
    %c0_63 = arith.constant 0 : index
    %260 = vector.load %arg6[%c0_62, %c0_63] : memref<1x128xf32, #tpu.memory_space<vmem>>, vector<1x128xf32>
    %261 = vector.broadcast %260 : vector<1x128xf32> to vector<8x128xf32>
    %262 = arith.addf %259, %261 : vector<8x128xf32>
    %c0_64 = arith.constant 0 : index
    %c0_65 = arith.constant 0 : index
    %263 = vector.load %arg7[%c0_64, %c0_65] : memref<8x128xf32, #tpu.memory_space<vmem>>, vector<8x128xf32>
    tpu.vector_store %arg7[%c0_64, %c0_65], %262 {strides = array<i32>} : memref<8x128xf32, #tpu.memory_space<vmem>>, vector<8x128xf32>,
    return
  }
  func.func @transform_0(%arg0: i32) -> (i32, i32) {
    %c0_i32 = arith.constant 0 : i32
    %c0_i32_0 = arith.constant 0 : i32
    %c0_i32_1 = arith.constant 0 : i32
    return %c0_i32, %c0_i32_0 : i32, i32
  }
  func.func @transform_1(%arg0: i32) -> (i32, i32) {
    %c0_i32 = arith.constant 0 : i32
    %c0_i32_0 = arith.constant 0 : i32
    %c0_i32_1 = arith.constant 0 : i32
    return %c0_i32, %c0_i32_0 : i32, i32
  }
  func.func @transform_2(%arg0: i32) -> (i32, i32) {
    %c0_i32 = arith.constant 0 : i32
    %c0_i32_0 = arith.constant 0 : i32
    %c0_i32_1 = arith.constant 0 : i32
    return %c0_i32, %c0_i32_0 : i32, i32
  }
  func.func @transform_3(%arg0: i32) -> (i32, i32) {
    %c0_i32 = arith.constant 0 : i32
    %c0_i32_0 = arith.constant 0 : i32
    %c0_i32_1 = arith.constant 0 : i32
    return %c0_i32, %c0_i32_0 : i32, i32
  }
  func.func @transform_4(%arg0: i32) -> (i32, i32) {
    %c0_i32 = arith.constant 0 : i32
    %c0_i32_0 = arith.constant 0 : i32
    %c0_i32_1 = arith.constant 0 : i32
    return %c0_i32, %c0_i32_0 : i32, i32
  }
  func.func @transform_5(%arg0: i32) -> (i32, i32) {
    %c0_i32 = arith.constant 0 : i32
    %c0_i32_0 = arith.constant 0 : i32
    %c0_i32_1 = arith.constant 0 : i32
    return %c0_i32, %c0_i32_0 : i32, i32
  }
  func.func @transform_6(%arg0: i32) -> (i32, i32) {
    %c0_i32 = arith.constant 0 : i32
    %c0_i32_0 = arith.constant 0 : i32
    %c0_i32_1 = arith.constant 0 : i32
    return %c0_i32, %c0_i32_0 : i32, i32
  }
}

</mosaic_0001>

<bundles_post_ra>
// kernel: tpu_custom_call.1
= control target key start
LH: loop header
LB: loop body
LE: loop exit
PB: predicated region body
PF: predicated region fallthrough
CT: control target
= control target key end

     0   :  { %11 = vsyncpa [#allocation4], 0  ;;  %s3062_s0 = inlined_call_operand.vmem [shape: f32[64,16], index: 0, kind: input, shape index: {}]   ;;  %s3063_s1 = inlined_call_operand.vmem [shape: f32[16,512], index: 1, kind: input, shape index: {}]   ;;  %s3064_s2 = inlined_call_operand.hbm [shape: f32[128,512], index: 2, kind: input, shape index: {}]   ;;  %s3065_s3 = inlined_call_operand.vmem [shape: f32[1,512], index: 3, kind: input, shape index: {}]   ;;  %s3066_s4 = inlined_call_operand.hbm [shape: f32[128,128], index: 4, kind: input, shape index: {}]   ;;  %s3067_s5 = inlined_call_operand.vmem [shape: f32[1,128], index: 5, kind: input, shape index: {}]   ;;  %s3068_s6 = inlined_call_operand.hbm [shape: f32[8,128], index: 6, kind: output, shape index: {}]  }
   0x1   :  { %12 = vsyncpa [#allocation7], 0 }
   0x2   :  { %13 = vsyncpa [#allocation5], 0  ;;  %s22_s23 = sshll.u32 %s3064_s2, 4  ;;  %s2006_s24 = smov [#allocation3]   ;;  %s23_s23 = int_to_ptr.hbm [resolvable:$true] %s22_s23 }
   0x3   :  { %s24_s25 = sshll.u32 %s2006_s24, 4  ;;  %s37_s28 = sshll.u32 %s3066_s4, 4  ;;  %s25_s25 = int_to_ptr.vmem [resolvable:$true] %s24_s25  ;;  %s38_s28 = int_to_ptr.hbm [resolvable:$true] %s37_s28 }
   0x4   :  { %s2007_s29 = smov 512   ;;  %s2008_s30 = smov 32  }
   0x5   :  { %30 = dma.hbm_to_vmem [thread:$0]  %s23_s23, 8192, %s25_s25, [#allocation4], %s2007_s29, %s2007_s29, %s2008_s30  }
   0x6   :  { %s2009_s7 = smov [#allocation6]   ;;  %s2010_s9 = smov 128  }
   0x7   :  { %s39_s8 = sshll.u32 %s2009_s7, 4  ;;  %s2011_s10 = smov 8   ;;  %s40_s8 = int_to_ptr.vmem [resolvable:$true] %s39_s8 }
   0x8   :  { %45 = dma.hbm_to_vmem [thread:$0]  %s38_s28, 2048, %s40_s8, [#allocation7], %s2010_s9, %s2010_s9, %s2011_s10  }
   0x9   :  { %2000 = dma.done.wait [#allocation4], 8192  }
   0xa   :  { %2001 = vsyncadd [#allocation4], 4294959104 }
   0xb   :  { %2002 = dma.done.wait [#allocation7], 2048  }
   0xc   :  { %2003 = vsyncadd [#allocation7], 4294965248  ;;  %v68_v0 = vld [vmem:[%s3063_s1 + $0x20] sm:$0xff]  ;;  %vm82_vm0 = vcmask 130048   ;;  %v2067_v3 = vld [vmem:[%s3062_s0 + $0x28] sm:$0xff]  ;;  %s2013_s16 = smov [#allocation8]  }
   0xd   :  { %v64_v1 = vld [vmem:[%s3063_s1] sm:$0xff]  ;;  %121 = vmatpush.msra.mxu0 %v68_v0  ;;  %1721 = vmatpush.msra.mxu1 %v68_v0  ;;  %v2072_v4 = vld [vmem:[%s3062_s0 + $0x30] sm:$0xff]  ;;  %v2077_v5 = vld [vmem:[%s3062_s0 + $0x38] sm:$0xff]  ;;  %s1645_s17 = sshll.u32 %s2013_s16, 4  ;;  %s1647_s20 = sshll.u32 %s3068_s6, 4  ;;  %s1646_s17 = int_to_ptr.vmem [resolvable:$true] %s1645_s17  ;;  %s1648_s20 = int_to_ptr.hbm [resolvable:$true] %s1647_s20 }
   0xe   :  { %1722 = vmatpush.msra.mxu2 %v68_v0  ;;  %1723 = vmatpush.msra.mxu3 %v68_v0  ;;  %v56_v2 = vld [vmem:[%s3062_s0] sm:$0xff]  ;;  %v69_v6 = vld [vmem:[%s3063_s1 + $0x28] sm:$0xff]  ;;  %v70_v7 = vld [vmem:[%s3063_s1 + $0x30] sm:$0xff] }
   0xf   :  { %122 = vmatpush.msra.mxu0 %v64_v1  ;;  %1724 = vmatpush.msra.mxu1 %v64_v1  ;;  %v71_v8 = vld [vmem:[%s3063_s1 + $0x38] sm:$0xff]  ;;  %v2091_v9 = vld [vmem:[#allocation3 + $0x1e0] sm:$0xff]  ;;  %v65_v10 = vld [vmem:[%s3063_s1 + $0x8] sm:$0xff] }
  0x10   :  { %1725 = vmatpush.msra.mxu2 %v64_v1  ;;  %1726 = vmatpush.msra.mxu3 %v64_v1  ;;  %v66_v11 = vld [vmem:[%s3063_s1 + $0x10] sm:$0xff]  ;;  %v67_v12 = vld [vmem:[%s3063_s1 + $0x18] sm:$0xff]  ;;  %v2106_v13 = vld [vmem:[#allocation3 + $0x1e8] sm:$0xff] }
  0x11   :  { %1665 = vmatmul.msk.f32.vlgmr.msra.gmra.mxu0 %vm82_vm0, %v56_v2  ;;  %1670 = vmatmul.msk.f32.vlgmr.msra.gmra.mxu1 %vm82_vm0, %v2067_v3  ;;  %v2109_v14 = vld [vmem:[#allocation3 + $0x1c0] sm:$0xff]  ;;  %v2111_v15 = vld [vmem:[#allocation3 + $0x1f8] sm:$0xff]  ;;  %v2113_v16 = vld [vmem:[#allocation3 + $0x1c8] sm:$0xff] }
  0x12   :  { %1671 = vmatmul.msk.f32.vlgmr.msra.gmra.mxu2 %vm82_vm0, %v2072_v4  ;;  %1672 = vmatmul.msk.f32.vlgmr.msra.gmra.mxu3 %vm82_vm0, %v2077_v5  ;;  %v2115_v17 = vld [vmem:[#allocation3 + $0x1f0] sm:$0xff]  ;;  %v57_v18 = vld [vmem:[%s3062_s0 + $0x8] sm:$0xff]  ;;  %v2124_v19 = vld [vmem:[#allocation3 + $0x1a0] sm:$0xff] }
  0x13   :  { %162 = vmatpush.msrb.mxu1 %v69_v6  ;;  %203 = vmatpush.msrb.mxu2 %v70_v7  ;;  %v2126_v20 = vld [vmem:[#allocation3 + $0x1a8] sm:$0xff]  ;;  %v2131_v21 = vld [vmem:[#allocation3 + $0x1d8] sm:$0xff]  ;;  %v2133_v22 = vld [vmem:[#allocation3 + $0x1d0] sm:$0xff] }
  0x14   :  { %244 = vmatpush.msrb.mxu3 %v71_v8  ;;  %374 = vmatpush.msrb.mxu0 %v2091_v9  ;;  %v2137_v23 = vld [vmem:[#allocation3 + $0x180] sm:$0xff]  ;;  %v2139_v24 = vld [vmem:[#allocation3 + $0x188] sm:$0xff]  ;;  %v2143_v25 = vld [vmem:[#allocation3 + $0x1b8] sm:$0xff] }
  0x15   :  { %163 = vmatpush.msrb.mxu1 %v65_v10  ;;  %204 = vmatpush.msrb.mxu2 %v66_v11  ;;  %v2145_v26 = vld [vmem:[#allocation3 + $0x1b0] sm:$0xff]  ;;  %v2147_v27 = vld [vmem:[#allocation3 + $0x160] sm:$0xff]  ;;  %v2150_v28 = vld [vmem:[#allocation3 + $0x168] sm:$0xff] }
  0x16   :  { %245 = vmatpush.msrb.mxu3 %v67_v12  ;;  %375 = vmatpush.msrb.mxu0 %v2109_v14  ;;  %v2155_v29 = vld [vmem:[#allocation3 + $0x198] sm:$0xff]  ;;  %v2157_v30 = vld [vmem:[#allocation3 + $0x190] sm:$0xff]  ;;  %v2166_v32 = vld [vmem:[#allocation3 + $0x140] sm:$0xff] }
  0x17   :  { %394 = vmatpush.msra.mxu1 %v2106_v13  ;;  %414 = vmatpush.msra.mxu2 %v2115_v17  ;;  %v58_v31 = vld [vmem:[%s3062_s0 + $0x10] sm:$0xff]  ;;  %v2169_v33 = vld [vmem:[#allocation3 + $0x148] sm:$0xff]  ;;  %v2174_v34 = vld [vmem:[#allocation3 + $0x178] sm:$0xff] }
  0x18   :  { %434 = vmatpush.msra.mxu3 %v2111_v15  ;;  %376 = vmatpush.msrb.mxu0 %v2124_v19  ;;  %v2176_v35 = vld [vmem:[#allocation3 + $0x170] sm:$0xff]  ;;  %v2180_v36 = vld [vmem:[#allocation3 + $0x120] sm:$0xff]  ;;  %v2182_v37 = vld [vmem:[#allocation3 + $0x128] sm:$0xff] }
  0x19   :  { %395 = vmatpush.msra.mxu1 %v2113_v16  ;;  %1666 = vmatmul.msk.f32.gmra.mxu0 %vm82_vm0, %v57_v18  ;;  %v2186_v38 = vld [vmem:[#allocation3 + $0x158] sm:$0xff]  ;;  %v2188_v39 = vld [vmem:[#allocation3 + $0x150] sm:$0xff]  ;;  %v2190_v40 = vld [vmem:[#allocation3 + $0x100] sm:$0xff] }
  0x1a   :  { %1673 = vmatmul.msk.f32.vlgmr.msrb.gmra.mxu1 %vm82_vm0, %v56_v2  ;;  %1681 = vmatmul.msk.f32.vlgmr.msrb.gmra.mxu2 %vm82_vm0, %v56_v2  ;;  %v2193_v41 = vld [vmem:[#allocation3 + $0x108] sm:$0xff]  ;;  %v2198_v42 = vld [vmem:[#allocation3 + $0x138] sm:$0xff]  ;;  %v2200_v43 = vld [vmem:[#allocation3 + $0x130] sm:$0xff] }
  0x1b   :  { %1689 = vmatmul.msk.f32.vlgmr.msrb.gmra.mxu3 %vm82_vm0, %v56_v2  ;;  %396 = vmatpush.msra.mxu1 %v2126_v20  ;;  %v59_v44 = vld [vmem:[%s3062_s0 + $0x18] sm:$0xff]  ;;  %v2209_v45 = vld [vmem:[#allocation3 + $0xe0] sm:$0xff]  ;;  %v2212_v46 = vld [vmem:[#allocation3 + $0xe8] sm:$0xff] }
  0x1c   :  { %435 = vmatpush.msra.mxu3 %v2131_v21  ;;  %415 = vmatpush.msra.mxu2 %v2133_v22  ;;  %v2217_v47 = vld [vmem:[#allocation3 + $0x118] sm:$0xff]  ;;  %v2219_v48 = vld [vmem:[#allocation3 + $0x110] sm:$0xff]  ;;  %v2223_v49 = vld [vmem:[#allocation3 + $0xc0] sm:$0xff] }
  0x1d   :  { %377 = vmatpush.msrb.mxu0 %v2137_v23  ;;  %397 = vmatpush.msra.mxu1 %v2139_v24  ;;  %v2225_v50 = vld [vmem:[#allocation3 + $0xc8] sm:$0xff]  ;;  %v2229_v51 = vld [vmem:[#allocation3 + $0xf8] sm:$0xff]  ;;  %v2231_v52 = vld [vmem:[#allocation3 + $0xf0] sm:$0xff] }
  0x1e   :  { %436 = vmatpush.msra.mxu3 %v2143_v25  ;;  %416 = vmatpush.msra.mxu2 %v2145_v26  ;;  %v2233_v53 = vld [vmem:[#allocation3 + $0xa0] sm:$0xff]  ;;  %v2236_v54 = vld [vmem:[#allocation3 + $0xa8] sm:$0xff]  ;;  %v2241_v55 = vld [vmem:[#allocation3 + $0xd8] sm:$0xff] }
  0x1f   :  { %378 = vmatpush.msrb.mxu0 %v2147_v27  ;;  %398 = vmatpush.msra.mxu1 %v2150_v28  ;;  %3164 = vst [vmem:[#allocation12_spill] sm:$0xff] %v2233_v53  ;;  %v2243_v56 = vld [vmem:[#allocation3 + $0xd0] sm:$0xff]  ;;  %v2245_v57 = vld [vmem:[#allocation3 + $0x80] sm:$0xff]  ;;  %v2260_v60 = vld [vmem:[#allocation3 + $0x88] sm:$0xff] }
  0x20   :  { %437 = vmatpush.msra.mxu3 %v2155_v29  ;;  %417 = vmatpush.msra.mxu2 %v2157_v30  ;;  %3165 = vst [vmem:[#allocation13_spill] sm:$0xff] %v2236_v54  ;;  %v60_v58 = vld [vmem:[%s3062_s0 + $0x20] sm:$0xff]  ;;  %v2262_v61 = vld [vmem:[#allocation3 + $0xb8] sm:$0xff]  ;;  %v2268_v63 = vld [vmem:[#allocation3 + $0xb0] sm:$0xff] }
  0x21   :  { %1667 = vmatmul.msk.f32.gmra.mxu0 %vm82_vm0, %v58_v31  ;;  %399 = vmatpush.msra.mxu1 %v2169_v33  ;;  %3166 = vst [vmem:[#allocation14_spill] sm:$0xff] %v2241_v55  ;;  %v2254_v59 = vld [vmem:[#allocation3 + $0x60] sm:$0xff]  ;;  %v2272_v0 = vld [vmem:[#allocation3 + $0x68] sm:$0xff]  ;;  %v2274_v1 = vld [vmem:[#allocation3 + $0x98] sm:$0xff] }
  0x22   :  { %1674 = vmatmul.msk.f32.gmra.mxu1 %vm82_vm0, %v57_v18  ;;  %1682 = vmatmul.msk.f32.gmra.mxu2 %vm82_vm0, %v57_v18  ;;  %3167 = vst [vmem:[#allocation15_spill] sm:$0xff] %v2245_v57  ;;  %v2266_v62 = vld [vmem:[#allocation3 + $0x40] sm:$0xff]  ;;  %v2280_v6 = vld [vmem:[#allocation3 + $0x90] sm:$0xff]  ;;  %v2283_v7 = vld [vmem:[#allocation3 + $0x48] sm:$0xff] }
  0x23   :  { %1690 = vmatmul.msk.f32.gmra.mxu3 %vm82_vm0, %v57_v18  ;;  %379 = vmatpush.msrb.mxu0 %v2166_v32  ;;  %3168 = vst [vmem:[#allocation16_spill] sm:$0xff] %v2254_v59  ;;  %v2276_v2 = vld [vmem:[#allocation3 + $0x20] sm:$0xff]  ;;  %v2286_v8 = vld [vmem:[#allocation3 + $0x78] sm:$0xff]  ;;  %v2296_v11 = vld [vmem:[#allocation3 + $0x28] sm:$0xff] }
  0x24   :  { %438 = vmatpush.msra.mxu3 %v2174_v34  ;;  %418 = vmatpush.msra.mxu2 %v2176_v35  ;;  %3169 = vst [vmem:[#allocation17_spill] sm:$0xff] %v2260_v60  ;;  %v2288_v10 = vld [vmem:[#allocation3] sm:$0xff]  ;;  %v2300_v12 = vld [vmem:[#allocation3 + $0x70] sm:$0xff]  ;;  %v2302_v18 = vld [vmem:[#allocation3 + $0x58] sm:$0xff] }
  0x25   :  { %380 = vmatpush.msrb.mxu0 %v2180_v36  ;;  %400 = vmatpush.msra.mxu1 %v2182_v37  ;;  %3170 = vst [vmem:[#allocation18_spill] sm:$0xff] %v2262_v61 }
  0x26   :  { %439 = vmatpush.msra.mxu3 %v2186_v38  ;;  %419 = vmatpush.msra.mxu2 %v2188_v39  ;;  %3171 = vst [vmem:[#allocation19_spill] sm:$0xff] %v2266_v62 }
  0x27   :  { %381 = vmatpush.msrb.mxu0 %v2190_v40  ;;  %401 = vmatpush.msra.mxu1 %v2193_v41  ;;  %3172 = vst [vmem:[#allocation20_spill] sm:$0xff] %v2268_v63 }
  0x28   :  { %440 = vmatpush.msra.mxu3 %v2198_v42  ;;  %420 = vmatpush.msra.mxu2 %v2200_v43  ;;  %3173 = vst [vmem:[#allocation21_spill] sm:$0xff] %v2272_v0 }
  0x29   :  { %1668 = vmatmul.msk.f32.gmra.mxu0 %vm82_vm0, %v59_v44  ;;  %402 = vmatpush.msra.mxu1 %v2212_v46  ;;  %3174 = vst [vmem:[#allocation22_spill] sm:$0xff] %v2274_v1 }
  0x2a   :  { %1675 = vmatmul.msk.f32.gmra.mxu1 %vm82_vm0, %v58_v31  ;;  %1683 = vmatmul.msk.f32.gmra.mxu2 %vm82_vm0, %v58_v31  ;;  %3175 = vst [vmem:[#allocation23_spill] sm:$0xff] %v2276_v2 }
  0x2b   :  { %1691 = vmatmul.msk.f32.gmra.mxu3 %vm82_vm0, %v58_v31  ;;  %382 = vmatpush.msrb.mxu0 %v2209_v45  ;;  %3176 = vst [vmem:[#allocation24_spill] sm:$0xff] %v2280_v6  ;;  %v2012_v31 = vmov 0.0  }
  0x2c   :  { %441 = vmatpush.msra.mxu3 %v2217_v47  ;;  %421 = vmatpush.msra.mxu2 %v2219_v48  ;;  %3177 = vst [vmem:[#allocation25_spill] sm:$0xff] %v2283_v7 }
  0x2d   :  { %383 = vmatpush.msrb.mxu0 %v2223_v49  ;;  %403 = vmatpush.msra.mxu1 %v2225_v50  ;;  %3178 = vst [vmem:[#allocation26_spill] sm:$0xff] %v2286_v8 }
  0x2e   :  { %442 = vmatpush.msra.mxu3 %v2229_v51  ;;  %422 = vmatpush.msra.mxu2 %v2231_v52  ;;  %3179 = vst [vmem:[#allocation27_spill] sm:$0xff] %v2288_v10 }
  0x2f   :  { %384 = vmatpush.msrb.mxu0 %v2233_v53  ;;  %404 = vmatpush.msra.mxu1 %v2236_v54  ;;  %3180 = vst [vmem:[#allocation28_spill] sm:$0xff] %v2296_v11 }
  0x30   :  { %443 = vmatpush.msra.mxu3 %v2241_v55  ;;  %423 = vmatpush.msra.mxu2 %v2243_v56  ;;  %3181 = vst [vmem:[#allocation29_spill] sm:$0xff] %v2300_v12 }
  0x31   :  { %385 = vmatpush.msrb.mxu0 %v2245_v57  ;;  %405 = vmatpush.msra.mxu1 %v2260_v60  ;;  %3182 = vst [vmem:[#allocation30_spill] sm:$0xff] %v2302_v18 }
  0x32   :  { %1676 = vmatmul.msk.f32.gmra.mxu1 %vm82_vm0, %v59_v44  ;;  %1669 = vmatmul.msk.f32.gmra.mxu0 %vm82_vm0, %v60_v58 }
  0x33   :  { %1684 = vmatmul.msk.f32.gmra.mxu2 %vm82_vm0, %v59_v44  ;;  %1692 = vmatmul.msk.f32.gmra.mxu3 %vm82_vm0, %v59_v44  ;;  %v2306_v44 = vld [vmem:[#allocation3 + $0x8] sm:$0xff] }
  0x34   :  { %386 = vmatpush.msrb.mxu0 %v2254_v59  ;;  %444 = vmatpush.msra.mxu3 %v2262_v61  ;;  %3183 = vst [vmem:[#allocation31_spill] sm:$0xff] %v2306_v44 }
  0x35   :  { %424 = vmatpush.msra.mxu2 %v2268_v63  ;;  %406 = vmatpush.msra.mxu1 %v2272_v0 }
  0x36   :  { %387 = vmatpush.msrb.mxu0 %v2266_v62  ;;  %445 = vmatpush.msra.mxu3 %v2274_v1 }
  0x37   :  { %425 = vmatpush.msra.mxu2 %v2280_v6  ;;  %407 = vmatpush.msra.mxu1 %v2283_v7  ;;  %v2317_v7 = vld [vmem:[#allocation3 + $0x30] sm:$0xff] }
  0x38   :  { %388 = vmatpush.msrb.mxu0 %v2276_v2  ;;  %446 = vmatpush.msra.mxu3 %v2286_v8  ;;  %v2310_v2 = vld [vmem:[#allocation3 + $0x50] sm:$0xff]  ;;  %3186 = vst [vmem:[#allocation34_spill] sm:$0xff] %v2317_v7  ;;  %v2319_v8 = vld [vmem:[#allocation3 + $0x18] sm:$0xff] }
  0x39   :  { %408 = vmatpush.msra.mxu1 %v2296_v11  ;;  %3184 = vst [vmem:[#allocation32_spill] sm:$0xff] %v2310_v2  ;;  %426 = vmatpush.msra.mxu2 %v2300_v12 }
  0x3a   :  { %389 = vmatpush.msrb.mxu0 %v2288_v10  ;;  %1677 = vmatmul.msk.f32.gmra.mxu1 %vm82_vm0, %v60_v58  ;;  %v2312_v10 = vld [vmem:[#allocation3 + $0x38] sm:$0xff]  ;;  %3187 = vst [vmem:[#allocation35_spill] sm:$0xff] %v2319_v8 }
  0x3b   :  { %1685 = vmatmul.msk.f32.gmra.mxu2 %vm82_vm0, %v60_v58  ;;  %390 = vmatmul.f32.vlgmr.msrb.gmra.mxu0 %v2012_v31  ;;  %3185 = vst [vmem:[#allocation33_spill] sm:$0xff] %v2312_v10 }
  0x3c   :  { %1693 = vmatmul.msk.f32.gmra.mxu3 %vm82_vm0, %v60_v58  ;;  %409 = vmatpush.msra.mxu1 %v2306_v44  ;;  %v2327_v58 = vld [vmem:[#allocation3 + $0x10] sm:$0xff] }
  0x3d   :  { %447 = vmatpush.msra.mxu3 %v2302_v18  ;;  %528 = vmatpush.msra.mxu0 %v2091_v9  ;;  %3188 = vst [vmem:[#allocation36_spill] sm:$0xff] %v2327_v58 }
  0x3e   :  { %427 = vmatpush.msra.mxu2 %v2310_v2  ;;  %548 = vmatpush.msrb.mxu1 %v2106_v13 }
  0x3f   :  { %448 = vmatpush.msra.mxu3 %v2312_v10  ;;  %529 = vmatpush.msra.mxu0 %v2109_v14 }
  0x40   :  { %428 = vmatpush.msra.mxu2 %v2317_v7  ;;  %549 = vmatpush.msrb.mxu1 %v2113_v16 }
  0x41   :  { %449 = vmatpush.msra.mxu3 %v2319_v8  ;;  %530 = vmatpush.msra.mxu0 %v2124_v19 }
  0x42   :  { %1678 = vmatmul.msk.f32.gmra.mxu1 %vm82_vm0, %v2067_v3  ;;  %429 = vmatpush.msra.mxu2 %v2327_v58 }
  0x43   :  { %588 = vmatpush.msrb.mxu3 %v2111_v15  ;;  %1686 = vmatmul.msk.f32.gmra.mxu2 %vm82_vm0, %v2067_v3 }
  0x44   :  { %1694 = vmatmul.msk.f32.gmra.mxu3 %vm82_vm0, %v2067_v3  ;;  %568 = vmatpush.msrb.mxu2 %v2115_v17  ;;  %v3189_v3 = vld [vmem:[#allocation26_spill] sm:$0xff] }
  0x45   :  { %589 = vmatpush.msrb.mxu3 %v2131_v21  ;;  %550 = vmatpush.msrb.mxu1 %v2126_v20 }
  0x46   :  { %569 = vmatpush.msrb.mxu2 %v2133_v22  ;;  %531 = vmatpush.msra.mxu0 %v2137_v23 }
  0x47   :  { %590 = vmatpush.msrb.mxu3 %v2143_v25  ;;  %551 = vmatpush.msrb.mxu1 %v2139_v24 }
  0x48   :  { %570 = vmatpush.msrb.mxu2 %v2145_v26  ;;  %532 = vmatpush.msra.mxu0 %v2147_v27 }
  0x49   :  { %591 = vmatpush.msrb.mxu3 %v2155_v29  ;;  %552 = vmatpush.msrb.mxu1 %v2150_v28 }
  0x4a   :  { %1679 = vmatmul.msk.f32.gmra.mxu1 %vm82_vm0, %v2072_v4  ;;  %571 = vmatpush.msrb.mxu2 %v2157_v30 }
  0x4b   :  { %1687 = vmatmul.msk.f32.gmra.mxu2 %vm82_vm0, %v2072_v4  ;;  %592 = vmatpush.msrb.mxu3 %v2174_v34 }
  0x4c   :  { %1695 = vmatmul.msk.f32.gmra.mxu3 %vm82_vm0, %v2072_v4  ;;  %533 = vmatpush.msra.mxu0 %v2166_v32  ;;  %v3190_v4 = vld [vmem:[#allocation25_spill] sm:$0xff] }
  0x4d   :  { %572 = vmatpush.msrb.mxu2 %v2176_v35  ;;  %553 = vmatpush.msrb.mxu1 %v2169_v33 }
  0x4e   :  { %593 = vmatpush.msrb.mxu3 %v2186_v38  ;;  %534 = vmatpush.msra.mxu0 %v2180_v36 }
  0x4f   :  { %573 = vmatpush.msrb.mxu2 %v2188_v39  ;;  %554 = vmatpush.msrb.mxu1 %v2182_v37 }
  0x50   :  { %594 = vmatpush.msrb.mxu3 %v2198_v42  ;;  %535 = vmatpush.msra.mxu0 %v2190_v40 }
  0x51   :  { %574 = vmatpush.msrb.mxu2 %v2200_v43  ;;  %555 = vmatpush.msrb.mxu1 %v2193_v41 }
  0x52   :  { %1680 = vmatmul.msk.f32.gmra.mxu1 %vm82_vm0, %v2077_v5  ;;  %595 = vmatpush.msrb.mxu3 %v2217_v47 }
  0x53   :  { %1688 = vmatmul.msk.f32.gmra.mxu2 %vm82_vm0, %v2077_v5  ;;  %536 = vmatpush.msra.mxu0 %v2209_v45 }
  0x54   :  { %1696 = vmatmul.msk.f32.gmra.mxu3 %vm82_vm0, %v2077_v5  ;;  %575 = vmatpush.msrb.mxu2 %v2219_v48  ;;  %v3191_v5 = vld [vmem:[#allocation23_spill] sm:$0xff] }
  0x55   :  { %556 = vmatpush.msrb.mxu1 %v2212_v46  ;;  %596 = vmatpush.msrb.mxu3 %v2229_v51 }
  0x56   :  { %576 = vmatpush.msrb.mxu2 %v2231_v52  ;;  %537 = vmatpush.msra.mxu0 %v2223_v49 }
  0x57   :  { %557 = vmatpush.msrb.mxu1 %v2225_v50  ;;  %597 = vmatpush.msrb.mxu3 %v2241_v55 }
  0x58   :  { %577 = vmatpush.msrb.mxu2 %v2243_v56  ;;  %538 = vmatpush.msra.mxu0 %v2233_v53 }
  0x59   :  { %558 = vmatpush.msrb.mxu1 %v2236_v54  ;;  %598 = vmatpush.msrb.mxu3 %v2262_v61 }
  0x5a   :  { %410 = vmatmul.f32.vlgmr.msra.gmra.mxu1 %v2012_v31  ;;  %578 = vmatpush.msrb.mxu2 %v2268_v63 }
  0x5b   :  { %430 = vmatmul.f32.vlgmr.msra.gmra.mxu2 %v2012_v31  ;;  %539 = vmatpush.msra.mxu0 %v2245_v57 }
  0x5c   :  { %450 = vmatmul.f32.vlgmr.msra.gmra.mxu3 %v2012_v31  ;;  %559 = vmatpush.msrb.mxu1 %v2260_v60  ;;  %v3192_v31 = vld [vmem:[#allocation27_spill] sm:$0xff] }
  0x5d   :  { %579 = vmatpush.msrb.mxu2 %v2280_v6  ;;  %540 = vmatpush.msra.mxu0 %v2254_v59 }
  0x5e   :  { %599 = vmatpush.msrb.mxu3 %v2274_v1  ;;  %560 = vmatpush.msrb.mxu1 %v2272_v0 }
  0x5f   :  { %580 = vmatpush.msrb.mxu2 %v2300_v12  ;;  %541 = vmatpush.msra.mxu0 %v2266_v62 }
  0x60   :  { %600 = vmatpush.msrb.mxu3 %v3189_v3  ;;  %561 = vmatpush.msrb.mxu1 %v3190_v4 }
  0x61   :  { %581 = vmatpush.msrb.mxu2 %v2310_v2  ;;  %542 = vmatpush.msra.mxu0 %v3191_v5 }
  0x62   :  { %601 = vmatpush.msrb.mxu3 %v2302_v18  ;;  %562 = vmatpush.msrb.mxu1 %v2296_v11 }
  0x63   :  { %582 = vmatpush.msrb.mxu2 %v2317_v7  ;;  %543 = vmatpush.msra.mxu0 %v3192_v31 }
  0x64   :  { %602 = vmatpush.msrb.mxu3 %v2312_v10  ;;  %563 = vmatpush.msrb.mxu1 %v2306_v44 }
  0x65   :  { %583 = vmatpush.msrb.mxu2 %v2327_v58  ;;  %682 = vmatpush.msrb.mxu0 %v2091_v9 }
  0x66   :  { %603 = vmatpush.msrb.mxu3 %v2319_v8  ;;  %702 = vmatpush.msra.mxu1 %v2106_v13 }
  0x67   :  { %722 = vmatpush.msra.mxu2 %v2115_v17  ;;  %683 = vmatpush.msrb.mxu0 %v2109_v14 }
  0x68   :  { %742 = vmatpush.msra.mxu3 %v2111_v15  ;;  %703 = vmatpush.msra.mxu1 %v2113_v16 }
  0x69   :  { %723 = vmatpush.msra.mxu2 %v2133_v22  ;;  %684 = vmatpush.msrb.mxu0 %v2124_v19 }
  0x6a   :  { %743 = vmatpush.msra.mxu3 %v2131_v21  ;;  %704 = vmatpush.msra.mxu1 %v2126_v20 }
  0x6b   :  { %724 = vmatpush.msra.mxu2 %v2145_v26  ;;  %685 = vmatpush.msrb.mxu0 %v2137_v23 }
  0x6c   :  { %744 = vmatpush.msra.mxu3 %v2143_v25  ;;  %705 = vmatpush.msra.mxu1 %v2139_v24 }
  0x6d   :  { %725 = vmatpush.msra.mxu2 %v2157_v30  ;;  %686 = vmatpush.msrb.mxu0 %v2147_v27 }
  0x6e   :  { %745 = vmatpush.msra.mxu3 %v2155_v29  ;;  %706 = vmatpush.msra.mxu1 %v2150_v28 }
  0x6f   :  { %726 = vmatpush.msra.mxu2 %v2176_v35  ;;  %687 = vmatpush.msrb.mxu0 %v2166_v32 }
  0x70   :  { %746 = vmatpush.msra.mxu3 %v2174_v34  ;;  %707 = vmatpush.msra.mxu1 %v2169_v33 }
  0x71   :  { %727 = vmatpush.msra.mxu2 %v2188_v39  ;;  %688 = vmatpush.msrb.mxu0 %v2180_v36 }
  0x72   :  { %747 = vmatpush.msra.mxu3 %v2186_v38  ;;  %708 = vmatpush.msra.mxu1 %v2182_v37 }
  0x73   :  { %728 = vmatpush.msra.mxu2 %v2200_v43  ;;  %689 = vmatpush.msrb.mxu0 %v2190_v40 }
  0x74   :  { %748 = vmatpush.msra.mxu3 %v2198_v42  ;;  %709 = vmatpush.msra.mxu1 %v2193_v41 }
  0x75   :  { %729 = vmatpush.msra.mxu2 %v2219_v48  ;;  %690 = vmatpush.msrb.mxu0 %v2209_v45 }
  0x76   :  { %749 = vmatpush.msra.mxu3 %v2217_v47  ;;  %710 = vmatpush.msra.mxu1 %v2212_v46 }
  0x77   :  { %730 = vmatpush.msra.mxu2 %v2231_v52  ;;  %691 = vmatpush.msrb.mxu0 %v2223_v49 }
  0x78   :  { %750 = vmatpush.msra.mxu3 %v2229_v51  ;;  %711 = vmatpush.msra.mxu1 %v2225_v50 }
  0x79   :  { %731 = vmatpush.msra.mxu2 %v2243_v56  ;;  %692 = vmatpush.msrb.mxu0 %v2233_v53 }
  0x7a   :  { %751 = vmatpush.msra.mxu3 %v2241_v55  ;;  %712 = vmatpush.msra.mxu1 %v2236_v54 }
  0x7b   :  { %732 = vmatpush.msra.mxu2 %v2268_v63  ;;  %693 = vmatpush.msrb.mxu0 %v2245_v57 }
  0x7c   :  { %752 = vmatpush.msra.mxu3 %v2262_v61  ;;  %713 = vmatpush.msra.mxu1 %v2260_v60 }
  0x7d   :  { %733 = vmatpush.msra.mxu2 %v2280_v6  ;;  %694 = vmatpush.msrb.mxu0 %v2254_v59 }
  0x7e   :  { %753 = vmatpush.msra.mxu3 %v2274_v1  ;;  %714 = vmatpush.msra.mxu1 %v2272_v0 }
  0x7f   :  { %734 = vmatpush.msra.mxu2 %v2300_v12  ;;  %695 = vmatpush.msrb.mxu0 %v2266_v62 }
  0x80   :  { %754 = vmatpush.msra.mxu3 %v3189_v3  ;;  %715 = vmatpush.msra.mxu1 %v3190_v4 }
  0x81   :  { %735 = vmatpush.msra.mxu2 %v2310_v2  ;;  %696 = vmatpush.msrb.mxu0 %v3191_v5 }
  0x82   :  { %755 = vmatpush.msra.mxu3 %v2302_v18  ;;  %716 = vmatpush.msra.mxu1 %v2296_v11  ;;  %v72_v18 = vld [vmem:[%s3065_s3] sm:$0xf] }
  0x83   :  { %736 = vmatpush.msra.mxu2 %v2317_v7  ;;  %697 = vmatpush.msrb.mxu0 %v3192_v31  ;;  %v74_v2 = vperm.slane %v72_v18, 0 }
  0x84   :  { %756 = vmatpush.msra.mxu3 %v2312_v10  ;;  %717 = vmatpush.msra.mxu1 %v2306_v44 }
  0x85   :  { %737 = vmatpush.msra.mxu2 %v2327_v58 }
  0x86   :  { %757 = vmatpush.msra.mxu3 %v2319_v8  ;;  %v75_v8 = vperm.slane %v72_v18, 1 }
  0x8e   :  { %v124_v5 = vpop.f32.mrf.mxu0  ;;  %v139_v4 = vpop.f32.mrf.mxu1 }
  0x8f   :  { %v2480_v11 = vadd.f32 %v139_v4, %v74_v2 }
  0x91   :  { %3193 = vst [vmem:[#allocation37_spill] sm:$0xff] %v2480_v11  ;;  %v2496_v11 = vperm.slane %v72_v18, 2 }
  0x95   :  { %v142_v7 = vpop.f32.mrf.mxu2  ;;  %v145_v62 = vpop.f32.mrf.mxu3 }
  0x96   :  { %v2482_v10 = vadd.f32 %v142_v7, %v74_v2  ;;  %v2484_v31 = vadd.f32 %v145_v62, %v74_v2  ;;  %v127_v44 = vpop.f32.mrf.mxu0  ;;  %v77_v7 = vperm.slane %v72_v18, 3 }
  0x97   :  { %v165_v3 = vpop.f32.mrf.mxu1  ;;  %v2486_v58 = vadd.f32 %v127_v44, %v74_v2 }
  0x98   :  { %3194 = vst [vmem:[#allocation38_spill] sm:$0xff] %v2482_v10 }
  0x99   :  { %3195 = vst [vmem:[#allocation39_spill] sm:$0xff] %v2484_v31 }
  0x9a   :  { %3196 = vst [vmem:[#allocation40_spill] sm:$0xff] %v2486_v58 }
  0x9d   :  { %v2488_v12 = vpop.f32.mrf.mxu2 }
  0x9e   :  { %v2490_v0 = vpop.f32.mrf.mxu3  ;;  %v130_v59 = vpop.f32.mrf.mxu0 }
  0x9f   :  { %v168_v1 = vpop.f32.mrf.mxu1  ;;  %v2492_v6 = vadd.f32 %v130_v59, %v74_v2 }
  0xa0   :  { %v2494_v4 = vadd.f32 %v168_v1, %v75_v8 }
  0xa1   :  { %3197 = vst [vmem:[#allocation41_spill] sm:$0xff] %v2492_v6 }
  0xa2   :  { %3198 = vst [vmem:[#allocation42_spill] sm:$0xff] %v2494_v4 }
  0xa5   :  { %v209_v62 = vpop.f32.mrf.mxu2 }
  0xa6   :  { %v250_v31 = vpop.f32.mrf.mxu3  ;;  %v2499_v10 = vadd.f32 %v209_v62, %v2496_v11  ;;  %v133_v58 = vpop.f32.mrf.mxu0 }
  0xa7   :  { %v2501_v44 = vadd.f32 %v250_v31, %v77_v7  ;;  %v171_v60 = vpop.f32.mrf.mxu1  ;;  %v2503_v57 = vadd.f32 %v133_v58, %v74_v2 }
  0xa8   :  { %3199 = vst [vmem:[#allocation43_spill] sm:$0xff] %v2499_v10  ;;  %v2505_v61 = vadd.f32 %v171_v60, %v75_v8 }
  0xa9   :  { %3200 = vst [vmem:[#allocation44_spill] sm:$0xff] %v2501_v44 }
  0xaa   :  { %3201 = vst [vmem:[#allocation45_spill] sm:$0xff] %v2503_v57 }
  0xab   :  { %3202 = vst [vmem:[#allocation46_spill] sm:$0xff] %v2505_v61 }
  0xad   :  { %v212_v59 = vpop.f32.mrf.mxu2 }
  0xae   :  { %v253_v6 = vpop.f32.mrf.mxu3  ;;  %v2508_v1 = vadd.f32 %v212_v59, %v2496_v11 }
  0xaf   :  { %v2510_v4 = vadd.f32 %v253_v6, %v77_v7  ;;  %v174_v18 = vpop.f32.mrf.mxu1  ;;  %v136_v63 = vpop.f32.mrf.mxu0 }
  0xb0   :  { %3203 = vst [vmem:[#allocation47_spill] sm:$0xff] %v2508_v1  ;;  %v2512_v54 = vadd.f32 %v174_v18, %v75_v8  ;;  %v2514_v62 = vadd.f32 %v136_v63, %v74_v2 }
  0xb1   :  { %3204 = vst [vmem:[#allocation48_spill] sm:$0xff] %v2510_v4 }
  0xb2   :  { %3205 = vst [vmem:[#allocation49_spill] sm:$0xff] %v2512_v54  ;;  %v125_v54 = vadd.f32 %v124_v5, %v74_v2 }
  0xb3   :  { %3206 = vst [vmem:[#allocation50_spill] sm:$0xff] %v2514_v62 }
  0xb6   :  { %v215_v31 = vpop.f32.mrf.mxu2  ;;  %v256_v58 = vpop.f32.mrf.mxu3 }
  0xb7   :  { %v2517_v10 = vadd.f32 %v215_v31, %v2496_v11  ;;  %v177_v60 = vpop.f32.mrf.mxu1  ;;  %v2519_v57 = vadd.f32 %v256_v58, %v77_v7 }
  0xb8   :  { %v2521_v61 = vadd.f32 %v177_v60, %v75_v8  ;;  %v391_v62 = vpop.f32.mrf.mxu0 }
  0xb9   :  { %3207 = vst [vmem:[#allocation51_spill] sm:$0xff] %v2517_v10  ;;  %v454_v31 = vadd.f32 %v391_v62, %v125_v54  ;;  %v166_v62 = vadd.f32 %v165_v3, %v75_v8 }
  0xba   :  { %3208 = vst [vmem:[#allocation52_spill] sm:$0xff] %v2519_v57 }
  0xbb   :  { %3209 = vst [vmem:[#allocation53_spill] sm:$0xff] %v2521_v61  ;;  %v1697_v61 = vmul.f32 -1.442695, %v454_v31 }
  0xbd   :  { %1736 = vpow2.f32 %v1697_v61 }
  0xbe   :  { %v218_v59 = vpop.f32.mrf.mxu2 }
  0xbf   :  { %v2524_v6 = vadd.f32 %v218_v59, %v2496_v11  ;;  %v259_v1 = vpop.f32.mrf.mxu3  ;;  %v180_v4 = vpop.f32.mrf.mxu1 }
  0xc0   :  { %v2526_v18 = vadd.f32 %v259_v1, %v77_v7  ;;  %v2528_v63 = vadd.f32 %v180_v4, %v75_v8 }
  0xc1   :  { %3210 = vst [vmem:[#allocation54_spill] sm:$0xff] %v2524_v6 }
  0xc2   :  { %3211 = vst [vmem:[#allocation55_spill] sm:$0xff] %v2526_v18 }
  0xc3   :  { %3212 = vst [vmem:[#allocation56_spill] sm:$0xff] %v2528_v63 }
  0xc6   :  { %v221_v10 = vpop.f32.mrf.mxu2 }
  0xc7   :  { %v2531_v44 = vadd.f32 %v221_v10, %v2496_v11  ;;  %v262_v58 = vpop.f32.mrf.mxu3  ;;  %v183_v60 = vpop.f32.mrf.mxu1 }
  0xc8   :  { %v2533_v57 = vadd.f32 %v262_v58, %v77_v7  ;;  %v2535_v59 = vadd.f32 %v183_v60, %v75_v8  ;;  %v1737_v10 = vpop.eup %1736 }
  0xc9   :  { %3213 = vst [vmem:[#allocation57_spill] sm:$0xff] %v2531_v44  ;;  %v461_v5 = vadd.f32 1.0, %v1737_v10 }
  0xca   :  { %3214 = vst [vmem:[#allocation58_spill] sm:$0xff] %v2533_v57 }
  0xcb   :  { %3215 = vst [vmem:[#allocation59_spill] sm:$0xff] %v2535_v59  ;;  %1738 = vrcp.f32 %v461_v5  ;;  %vm467_vm2 = vweird.f32 %v461_v5 }
  0xce   :  { %v224_v6 = vpop.f32.mrf.mxu2 }
  0xcf   :  { %v2538_v1 = vadd.f32 %v224_v6, %v2496_v11  ;;  %v265_v4 = vpop.f32.mrf.mxu3  ;;  %v186_v63 = vpop.f32.mrf.mxu1 }
  0xd0   :  { %v2540_v2 = vadd.f32 %v265_v4, %v77_v7  ;;  %v2542_v54 = vadd.f32 %v186_v63, %v75_v8  ;;  %v248_v4 = vadd.f32 %v2490_v0, %v77_v7 }
  0xd1   :  { %3216 = vst [vmem:[#allocation60_spill] sm:$0xff] %v2538_v1  ;;  %v1739_v1 = vpop.eup %1738 }
  0xd2   :  { %3217 = vst [vmem:[#allocation61_spill] sm:$0xff] %v2540_v2  ;;  %v463_v10 = vmul.f32 %v1739_v1, %v461_v5  ;;  %vm468_vm1 = vweird.f32 %v1739_v1 }
  0xd3   :  { %3218 = vst [vmem:[#allocation62_spill] sm:$0xff] %v2542_v54  ;;  %vm469_vm4 = vmor %vm467_vm2, %vm468_vm1 }
  0xd6   :  { %v227_v44 = vpop.f32.mrf.mxu2 }
  0xd7   :  { %v2545_v31 = vadd.f32 %v227_v44, %v2496_v11  ;;  %v268_v58 = vpop.f32.mrf.mxu3  ;;  %v411_v60 = vpop.f32.mrf.mxu1 }
  0xd8   :  { %v2547_v61 = vadd.f32 %v268_v58, %v77_v7  ;;  %v455_v59 = vadd.f32 %v411_v60, %v166_v62  ;;  %v207_v58 = vadd.f32 %v2488_v12, %v2496_v11 }
  0xd9   :  { %3219 = vst [vmem:[#allocation63_spill] sm:$0xff] %v2545_v31  ;;  %v464_v31 = vsub.f32 1.0, %v463_v10 }
  0xda   :  { %3220 = vst [vmem:[#allocation64_spill] sm:$0xff] %v2547_v61  ;;  %v1698_v6 = vmul.f32 -1.442695, %v455_v59 }
  0xdb   :  { %v465_v59 = vmul.f32 %v1739_v1, %v464_v31 }
  0xdc   :  { %1740 = vpow2.f32 %v1698_v6 }
  0xde   :  { %v431_v44 = vpop.f32.mrf.mxu2 }
  0xdf   :  { %v451_v63 = vpop.f32.mrf.mxu3  ;;  %v456_v62 = vadd.f32 %v431_v44, %v207_v58 }
  0xe0   :  { %v457_v54 = vadd.f32 %v451_v63, %v248_v4  ;;  %v466_v4 = vadd.f32 %v1739_v1, %v465_v59 }
  0xe2   :  { %v1741_v2 = vpop.eup %1740  ;;  %v1699_v8 = vmul.f32 -1.442695, %v457_v54  ;;  %v470_v12 = vsel %vm469_vm4, %v1739_v1, %v466_v4 }
  0xe3   :  { %v480_v3 = vadd.f32 1.0, %v1741_v2  ;;  %v473_v2 = vand.u32 2147483648, %v461_v5 }
  0xe4   :  { %1742 = vpow2.f32 %v1699_v8  ;;  %v471_v8 = vand.u32 2147483647, %v461_v5 }
  0xe5   :  { %1744 = vrcp.f32 %v480_v3  ;;  %v492_v54 = vand.u32 2147483648, %v480_v3  ;;  %v490_v57 = vand.u32 2147483647, %v480_v3  ;;  %vm486_vm5 = vweird.f32 %v480_v3 }
  0xe6   :  { %1746 = vtanh.f32 %v456_v62  ;;  %v474_v58 = vor.u32 1.1754944e-38, %v473_v2  ;;  %vm472_vm7 = vcmp.eq.f32.partialorder %v471_v8, 8.507059e+37 }
  0xe7   :  { %v493_v44 = vor.u32 1.1754944e-38, %v492_v54  ;;  %vm491_vm8 = vcmp.eq.f32.partialorder %v490_v57, 8.507059e+37 }
  0xe8   :  { %v475_v59 = vsel %vm472_vm7, %v474_v58, %v470_v12 }
  0xea   :  { %v1743_v60 = vpop.eup %1742 }
  0xeb   :  { %v1745_v6 = vpop.eup %1744  ;;  %v500_v61 = vadd.f32 1.0, %v1743_v60 }
  0xec   :  { %v482_v0 = vmul.f32 %v1745_v6, %v480_v3  ;;  %vm487_vm3 = vweird.f32 %v1745_v6  ;;  %v1747_v11 = vpop.eup %1746 }
  0xed   :  { %1748 = vrcp.f32 %v500_v61  ;;  %vm488_vm6 = vmor %vm486_vm5, %vm487_vm3  ;;  %v512_v3 = vand.u32 2147483648, %v500_v61  ;;  %vm506_vm10 = vweird.f32 %v500_v61  ;;  %v510_v4 = vand.u32 2147483647, %v500_v61 }
  0xee   :  { %v483_v7 = vsub.f32 1.0, %v482_v0 }
  0xef   :  { %vm511_vm12 = vcmp.eq.f32.partialorder %v510_v4, 8.507059e+37 }
  0xf0   :  { %v484_v63 = vmul.f32 %v1745_v6, %v483_v7  ;;  %v517_v7 = vmul.f32 %v1747_v11, %v475_v59 }
  0xf2   :  { %v485_v31 = vadd.f32 %v1745_v6, %v484_v63 }
  0xf3   :  { %v1749_v10 = vpop.eup %1748 }
  0xf4   :  { %v489_v62 = vsel %vm488_vm6, %v1745_v6, %v485_v31  ;;  %v502_v60 = vmul.f32 %v1749_v10, %v500_v61  ;;  %vm507_vm9 = vweird.f32 %v1749_v10  ;;  %v513_v6 = vor.u32 1.1754944e-38, %v512_v3  ;;  %v3249_v31 = vld [vmem:[#allocation43_spill] sm:$0xff] }
  0xf5   :  { %v494_v0 = vsel %vm491_vm8, %v493_v44, %v489_v62  ;;  %vm508_vm11 = vmor %vm506_vm10, %vm507_vm9 }
  0xf6   :  { %v516_v18 = vmul.f32 0.0, %v494_v0  ;;  %v503_v5 = vsub.f32 1.0, %v502_v60 }
  0xf8   :  { %v2552_v53 = vadd.f32 %v517_v7, %v516_v18  ;;  %v504_v55 = vmul.f32 %v1749_v10, %v503_v5 }
  0xfa   :  { %1750 = vtanh.f32 %v2552_v53  ;;  %v505_v1 = vadd.f32 %v1749_v10, %v504_v55 }
  0xfc   :  { %v509_v54 = vsel %vm508_vm11, %v1749_v10, %v505_v1 }
  0xfd   :  { %v514_v2 = vsel %vm511_vm12, %v513_v6, %v509_v54 }
 0x100   :  { %v1751_v57 = vpop.eup %1750 }
 0x101   :  { %v520_v63 = vmul.f32 %v1751_v57, %v514_v2 }
 0x103   :  { %544 = vmatmul.f32.vlgmr.msra.gmra.mxu0 %v520_v63  ;;  %564 = vmatmul.f32.vlgmr.msrb.gmra.mxu1 %v520_v63 }
 0x104   :  { %584 = vmatmul.f32.vlgmr.msrb.gmra.mxu2 %v520_v63  ;;  %604 = vmatmul.f32.vlgmr.msrb.gmra.mxu3 %v520_v63 }
 0x105   :  { %836 = vmatpush.msra.mxu0 %v2091_v9  ;;  %856 = vmatpush.msrb.mxu1 %v2106_v13  ;;  %v3221_v9 = vld [vmem:[#allocation14_spill] sm:$0xff]  ;;  %v3222_v13 = vld [vmem:[#allocation12_spill] sm:$0xff] }
 0x106   :  { %876 = vmatpush.msrb.mxu2 %v2115_v17  ;;  %896 = vmatpush.msrb.mxu3 %v2111_v15  ;;  %v3224_v15 = vld [vmem:[#allocation20_spill] sm:$0xff]  ;;  %v3226_v17 = vld [vmem:[#allocation15_spill] sm:$0xff] }
 0x107   :  { %837 = vmatpush.msra.mxu0 %v2109_v14  ;;  %857 = vmatpush.msrb.mxu1 %v2113_v16  ;;  %v3223_v14 = vld [vmem:[#allocation13_spill] sm:$0xff]  ;;  %v3225_v16 = vld [vmem:[#allocation18_spill] sm:$0xff] }
 0x108   :  { %877 = vmatpush.msrb.mxu2 %v2133_v22  ;;  %897 = vmatpush.msrb.mxu3 %v2131_v21  ;;  %v3229_v21 = vld [vmem:[#allocation22_spill] sm:$0xff]  ;;  %v3230_v22 = vld [vmem:[#allocation16_spill] sm:$0xff] }
 0x109   :  { %838 = vmatpush.msra.mxu0 %v2124_v19  ;;  %858 = vmatpush.msrb.mxu1 %v2126_v20  ;;  %v3227_v19 = vld [vmem:[#allocation17_spill] sm:$0xff]  ;;  %v3228_v20 = vld [vmem:[#allocation24_spill] sm:$0xff] }
 0x10a   :  { %878 = vmatpush.msrb.mxu2 %v2145_v26  ;;  %898 = vmatpush.msrb.mxu3 %v2143_v25  ;;  %v3233_v25 = vld [vmem:[#allocation26_spill] sm:$0xff]  ;;  %v3234_v26 = vld [vmem:[#allocation19_spill] sm:$0xff] }
 0x10b   :  { %839 = vmatpush.msra.mxu0 %v2137_v23  ;;  %859 = vmatpush.msrb.mxu1 %v2139_v24  ;;  %v3231_v23 = vld [vmem:[#allocation21_spill] sm:$0xff] }
 0x10c   :  { %879 = vmatpush.msrb.mxu2 %v2157_v30  ;;  %899 = vmatpush.msrb.mxu3 %v2155_v29  ;;  %v3232_v24 = vld [vmem:[#allocation29_spill] sm:$0xff]  ;;  %v3237_v29 = vld [vmem:[#allocation30_spill] sm:$0xff]  ;;  %v3238_v30 = vld [vmem:[#allocation23_spill] sm:$0xff] }
 0x10d   :  { %840 = vmatpush.msra.mxu0 %v2147_v27  ;;  %860 = vmatpush.msrb.mxu1 %v2150_v28  ;;  %v3235_v27 = vld [vmem:[#allocation25_spill] sm:$0xff]  ;;  %v3236_v28 = vld [vmem:[#allocation32_spill] sm:$0xff] }
 0x10e   :  { %880 = vmatpush.msrb.mxu2 %v2176_v35  ;;  %900 = vmatpush.msrb.mxu3 %v2174_v34  ;;  %v3241_v34 = vld [vmem:[#allocation33_spill] sm:$0xff]  ;;  %v3242_v35 = vld [vmem:[#allocation27_spill] sm:$0xff] }
 0x10f   :  { %841 = vmatpush.msra.mxu0 %v2166_v32  ;;  %861 = vmatpush.msrb.mxu1 %v2169_v33  ;;  %v3239_v32 = vld [vmem:[#allocation28_spill] sm:$0xff]  ;;  %v3240_v33 = vld [vmem:[#allocation34_spill] sm:$0xff] }
 0x110   :  { %881 = vmatpush.msrb.mxu2 %v2188_v39  ;;  %901 = vmatpush.msrb.mxu3 %v2186_v38  ;;  %v3245_v38 = vld [vmem:[#allocation35_spill] sm:$0xff] }
 0x111   :  { %842 = vmatpush.msra.mxu0 %v2180_v36  ;;  %862 = vmatpush.msrb.mxu1 %v2182_v37  ;;  %v3243_v36 = vld [vmem:[#allocation31_spill] sm:$0xff]  ;;  %v3244_v37 = vld [vmem:[#allocation36_spill] sm:$0xff] }
 0x112   :  { %882 = vmatpush.msrb.mxu2 %v2200_v43  ;;  %902 = vmatpush.msrb.mxu3 %v2198_v42  ;;  %v3247_v43 = vld [vmem:[#allocation42_spill] sm:$0xff] }
 0x113   :  { %843 = vmatpush.msra.mxu0 %v2190_v40  ;;  %863 = vmatpush.msrb.mxu1 %v2193_v41  ;;  %v3246_v41 = vld [vmem:[#allocation40_spill] sm:$0xff] }
 0x114   :  { %883 = vmatpush.msrb.mxu2 %v2219_v48  ;;  %903 = vmatpush.msrb.mxu3 %v2217_v47 }
 0x115   :  { %844 = vmatpush.msra.mxu0 %v2209_v45  ;;  %864 = vmatpush.msrb.mxu1 %v2212_v46 }
 0x116   :  { %884 = vmatpush.msrb.mxu2 %v2231_v52  ;;  %904 = vmatpush.msrb.mxu3 %v2229_v51 }
 0x117   :  { %845 = vmatpush.msra.mxu0 %v2223_v49  ;;  %865 = vmatpush.msrb.mxu1 %v2225_v50  ;;  %v3248_v49 = vld [vmem:[#allocation44_spill] sm:$0xff] }
 0x118   :  { %885 = vmatpush.msrb.mxu2 %v2243_v56  ;;  %905 = vmatpush.msrb.mxu3 %v3221_v9 }
 0x119   :  { %846 = vmatpush.msra.mxu0 %v3222_v13  ;;  %866 = vmatpush.msrb.mxu1 %v3223_v14 }
 0x11a   :  { %886 = vmatpush.msrb.mxu2 %v3224_v15  ;;  %906 = vmatpush.msrb.mxu3 %v3225_v16 }
 0x11b   :  { %847 = vmatpush.msra.mxu0 %v3226_v17  ;;  %867 = vmatpush.msrb.mxu1 %v3227_v19 }
 0x11c   :  { %887 = vmatpush.msrb.mxu2 %v3228_v20  ;;  %907 = vmatpush.msrb.mxu3 %v3229_v21 }
 0x11d   :  { %848 = vmatpush.msra.mxu0 %v3230_v22  ;;  %868 = vmatpush.msrb.mxu1 %v3231_v23 }
 0x11e   :  { %888 = vmatpush.msrb.mxu2 %v3232_v24  ;;  %908 = vmatpush.msrb.mxu3 %v3233_v25 }
 0x11f   :  { %849 = vmatpush.msra.mxu0 %v3234_v26  ;;  %869 = vmatpush.msrb.mxu1 %v3235_v27 }
 0x120   :  { %889 = vmatpush.msrb.mxu2 %v3236_v28  ;;  %909 = vmatpush.msrb.mxu3 %v3237_v29 }
 0x121   :  { %850 = vmatpush.msra.mxu0 %v3238_v30  ;;  %870 = vmatpush.msrb.mxu1 %v3239_v32 }
 0x122   :  { %890 = vmatpush.msrb.mxu2 %v3240_v33  ;;  %910 = vmatpush.msrb.mxu3 %v3241_v34 }
 0x123   :  { %851 = vmatpush.msra.mxu0 %v3242_v35  ;;  %871 = vmatpush.msrb.mxu1 %v3243_v36 }
 0x124   :  { %891 = vmatpush.msrb.mxu2 %v3244_v37  ;;  %911 = vmatpush.msrb.mxu3 %v3245_v38 }
 0x180   :  { %v545_v39 = vpop.f32.mrf.mxu0  ;;  %v565_v40 = vpop.f32.mrf.mxu1 }
 0x181   :  { %v608_v42 = vadd.f32 %v545_v39, %v3246_v41  ;;  %v609_v45 = vadd.f32 %v565_v40, %v3247_v43 }
 0x183   :  { %v1700_v46 = vmul.f32 -1.442695, %v608_v42  ;;  %v1701_v47 = vmul.f32 -1.442695, %v609_v45  ;;  %v2630_v45 = vld [vmem:[#allocation3 + $0x1e8] sm:$0xff] }
 0x185   :  { %1752 = vpow2.f32 %v1700_v46  ;;  %v2633_v46 = vld [vmem:[#allocation3 + $0x1f0] sm:$0xff] }
 0x186   :  { %1754 = vpow2.f32 %v1701_v47  ;;  %v2636_v47 = vld [vmem:[#allocation3 + $0x1f8] sm:$0xff] }
 0x187   :  { %v605_v48 = vpop.f32.mrf.mxu3  ;;  %v585_v61 = vpop.f32.mrf.mxu2 }
 0x188   :  { %v611_v50 = vadd.f32 %v605_v48, %v3248_v49  ;;  %v610_v10 = vadd.f32 %v585_v61, %v3249_v31  ;;  %v2639_v48 = vld [vmem:[#allocation3 + $0x1c0] sm:$0xff]  ;;  %v2642_v49 = vld [vmem:[#allocation3 + $0x1c8] sm:$0xff] }
 0x189   :  { %v2663_v61 = vld [vmem:[#allocation3 + $0x180] sm:$0xff] }
 0x18a   :  { %v1702_v51 = vmul.f32 -1.442695, %v611_v50  ;;  %v2645_v50 = vld [vmem:[#allocation3 + $0x1d0] sm:$0xff]  ;;  %v2675_v31 = vld [vmem:[#allocation3 + $0x160] sm:$0xff] }
 0x18b   :  { %v1753_v52 = vpop.eup %1752 }
 0x18c   :  { %v1755_v55 = vpop.eup %1754  ;;  %v615_v56 = vadd.f32 1.0, %v1753_v52  ;;  %1756 = vpow2.f32 %v1702_v51  ;;  %v2648_v51 = vld [vmem:[#allocation3 + $0x1d8] sm:$0xff]  ;;  %v2651_v52 = vld [vmem:[#allocation3 + $0x1a0] sm:$0xff] }
 0x18d   :  { %v634_v18 = vadd.f32 1.0, %v1755_v55  ;;  %v2654_v55 = vld [vmem:[#allocation3 + $0x1a8] sm:$0xff] }
 0x18e   :  { %1758 = vrcp.f32 %v615_v56  ;;  %v627_v0 = vand.u32 2147483648, %v615_v56  ;;  %v625_v1 = vand.u32 2147483647, %v615_v56  ;;  %vm621_vm15 = vweird.f32 %v615_v56 }
 0x18f   :  { %1760 = vrcp.f32 %v634_v18  ;;  %v646_v7 = vand.u32 2147483648, %v634_v18  ;;  %v644_v4 = vand.u32 2147483647, %v634_v18  ;;  %vm640_vm0 = vweird.f32 %v634_v18 }
 0x190   :  { %v628_v57 = vor.u32 1.1754944e-38, %v627_v0  ;;  %vm626_vm3 = vcmp.eq.f32.partialorder %v625_v1, 8.507059e+37  ;;  %v2696_v0 = vld [vmem:[#allocation3 + $0x158] sm:$0xff]  ;;  %v2705_v1 = vld [vmem:[#allocation3 + $0x130] sm:$0xff] }
 0x191   :  { %v647_v9 = vor.u32 1.1754944e-38, %v646_v7  ;;  %vm645_vm4 = vcmp.eq.f32.partialorder %v644_v4, 8.507059e+37  ;;  %v2699_v7 = vld [vmem:[#allocation3 + $0x120] sm:$0xff] }
 0x192   :  { %v1757_v8 = vpop.eup %1756  ;;  %v2711_v4 = vld [vmem:[#allocation3 + $0x100] sm:$0xff] }
 0x193   :  { %v654_v11 = vadd.f32 1.0, %v1757_v8  ;;  %v2666_v8 = vld [vmem:[#allocation3 + $0x188] sm:$0xff] }
 0x194   :  { %v1759_v12 = vpop.eup %1758 }
 0x195   :  { %v1761_v44 = vpop.eup %1760  ;;  %v617_v58 = vmul.f32 %v1759_v12, %v615_v56  ;;  %1762 = vrcp.f32 %v654_v11  ;;  %vm622_vm13 = vweird.f32 %v1759_v12  ;;  %v666_v30 = vand.u32 2147483648, %v654_v11  ;;  %v2657_v56 = vld [vmem:[#allocation3 + $0x1b0] sm:$0xff] }
 0x196   :  { %v636_v62 = vmul.f32 %v1761_v44, %v634_v18  ;;  %1764 = vtanh.f32 %v610_v10  ;;  %vm641_vm14 = vweird.f32 %v1761_v44  ;;  %vm623_vm1 = vmor %vm621_vm15, %vm622_vm13  ;;  %vm660_vm6 = vweird.f32 %v654_v11  ;;  %v2660_v18 = vld [vmem:[#allocation3 + $0x1b8] sm:$0xff]  ;;  %v2678_v10 = vld [vmem:[#allocation3 + $0x168] sm:$0xff] }
 0x197   :  { %v618_v60 = vsub.f32 1.0, %v617_v58  ;;  %vm642_vm2 = vmor %vm640_vm0, %vm641_vm14  ;;  %v664_v35 = vand.u32 2147483647, %v654_v11  ;;  %v667_v40 = vor.u32 1.1754944e-38, %v666_v30  ;;  %v2684_v58 = vld [vmem:[#allocation3 + $0x178] sm:$0xff]  ;;  %v2762_v30 = vld [vmem:[#allocation3 + $0x88] sm:$0xff] }
 0x198   :  { %v637_v59 = vsub.f32 1.0, %v636_v62  ;;  %v2687_v62 = vld [vmem:[#allocation3 + $0x140] sm:$0xff]  ;;  %3257 = vst [vmem:[#allocation24_spill] sm:$0xff] %v2762_v30 }
 0x199   :  { %v619_v5 = vmul.f32 %v1759_v12, %v618_v60  ;;  %vm665_vm8 = vcmp.eq.f32.partialorder %v664_v35, 8.507059e+37  ;;  %v2690_v60 = vld [vmem:[#allocation3 + $0x148] sm:$0xff]  ;;  %v2766_v35 = vld [vmem:[#allocation3 + $0x98] sm:$0xff] }
 0x19a   :  { %v638_v3 = vmul.f32 %v1761_v44, %v637_v59  ;;  %v2693_v59 = vld [vmem:[#allocation3 + $0x150] sm:$0xff]  ;;  %3258 = vst [vmem:[#allocation22_spill] sm:$0xff] %v2766_v35 }
 0x19b   :  { %v1763_v54 = vpop.eup %1762  ;;  %v620_v6 = vadd.f32 %v1759_v12, %v619_v5  ;;  %v2702_v5 = vld [vmem:[#allocation3 + $0x128] sm:$0xff] }
 0x19c   :  { %v639_v2 = vadd.f32 %v1761_v44, %v638_v3  ;;  %v656_v63 = vmul.f32 %v1763_v54, %v654_v11  ;;  %v1765_v14 = vpop.eup %1764  ;;  %vm661_vm5 = vweird.f32 %v1763_v54  ;;  %v2669_v11 = vld [vmem:[#allocation3 + $0x190] sm:$0xff]  ;;  %v2708_v3 = vld [vmem:[#allocation3 + $0x138] sm:$0xff] }
 0x19d   :  { %v624_v13 = vsel %vm623_vm1, %v1759_v12, %v620_v6  ;;  %vm662_vm7 = vmor %vm660_vm6, %vm661_vm5  ;;  %v2672_v12 = vld [vmem:[#allocation3 + $0x198] sm:$0xff]  ;;  %v2717_v6 = vld [vmem:[#allocation3 + $0x110] sm:$0xff] }
 0x19e   :  { %v629_v15 = vsel %vm626_vm3, %v628_v57, %v624_v13  ;;  %v643_v16 = vsel %vm642_vm2, %v1761_v44, %v639_v2  ;;  %v657_v17 = vsub.f32 1.0, %v656_v63  ;;  %v2681_v44 = vld [vmem:[#allocation3 + $0x170] sm:$0xff]  ;;  %v2720_v57 = vld [vmem:[#allocation3 + $0x118] sm:$0xff]  ;;  %v2723_v2 = vld [vmem:[#allocation3 + $0xe0] sm:$0xff] }
 0x19f   :  { %v648_v19 = vsel %vm645_vm4, %v647_v9, %v643_v16  ;;  %v671_v21 = vmul.f32 %v1765_v14, %v629_v15  ;;  %v2726_v63 = vld [vmem:[#allocation3 + $0xe8] sm:$0xff]  ;;  %v2729_v9 = vld [vmem:[#allocation3 + $0xf0] sm:$0xff]  ;;  %v2732_v13 = vld [vmem:[#allocation3 + $0xf8] sm:$0xff] }
 0x1a0   :  { %v670_v22 = vmul.f32 %v648_v19, %v2552_v53  ;;  %v658_v23 = vmul.f32 %v1763_v54, %v657_v17  ;;  %v2627_v53 = vld [vmem:[#allocation3 + $0x1e0] sm:$0xff]  ;;  %v2738_v15 = vld [vmem:[#allocation3 + $0xc8] sm:$0xff]  ;;  %v2741_v16 = vld [vmem:[#allocation3 + $0xd0] sm:$0xff] }
 0x1a1   :  { %v2735_v14 = vld [vmem:[#allocation3 + $0xc0] sm:$0xff]  ;;  %3250 = vst [vmem:[#allocation14_spill] sm:$0xff] %v2741_v16  ;;  %v2744_v17 = vld [vmem:[#allocation3 + $0xd8] sm:$0xff] }
 0x1a2   :  { %v2624_v26 = vadd.f32 %v671_v21, %v670_v22  ;;  %v659_v27 = vadd.f32 %v1763_v54, %v658_v23  ;;  %3251 = vst [vmem:[#allocation12_spill] sm:$0xff] %v2744_v17  ;;  %v2747_v19 = vld [vmem:[#allocation3 + $0xa0] sm:$0xff]  ;;  %v2750_v21 = vld [vmem:[#allocation3 + $0xa8] sm:$0xff]  ;;  %v2753_v22 = vld [vmem:[#allocation3 + $0xb0] sm:$0xff] }
 0x1a3   :  { %3252 = vst [vmem:[#allocation13_spill] sm:$0xff] %v2747_v19  ;;  %v2756_v23 = vld [vmem:[#allocation3 + $0xb8] sm:$0xff] }
 0x1a4   :  { %1766 = vtanh.f32 %v2624_v26  ;;  %v663_v39 = vsel %vm662_vm7, %v1763_v54, %v659_v27  ;;  %v2714_v54 = vld [vmem:[#allocation3 + $0x108] sm:$0xff]  ;;  %3253 = vst [vmem:[#allocation20_spill] sm:$0xff] %v2750_v21  ;;  %v2759_v27 = vld [vmem:[#allocation3 + $0x80] sm:$0xff] }
 0x1a5   :  { %v668_v42 = vsel %vm665_vm8, %v667_v40, %v663_v39  ;;  %3254 = vst [vmem:[#allocation18_spill] sm:$0xff] %v2753_v22  ;;  %v2769_v39 = vld [vmem:[#allocation3 + $0x60] sm:$0xff]  ;;  %v2772_v40 = vld [vmem:[#allocation3 + $0x68] sm:$0xff] }
 0x1a6   :  { %3255 = vst [vmem:[#allocation15_spill] sm:$0xff] %v2756_v23 }
 0x1a7   :  { %3256 = vst [vmem:[#allocation17_spill] sm:$0xff] %v2759_v27 }
 0x1a8   :  { %3259 = vst [vmem:[#allocation16_spill] sm:$0xff] %v2769_v39 }
 0x1a9   :  { %3260 = vst [vmem:[#allocation21_spill] sm:$0xff] %v2772_v40 }
 0x1aa   :  { %v1767_v41 = vpop.eup %1766 }
 0x1ab   :  { %v674_v43 = vmul.f32 %v1767_v41, %v668_v42  ;;  %v2777_v41 = vld [vmem:[#allocation3 + $0x40] sm:$0xff] }
 0x1ac   :  { %3261 = vst [vmem:[#allocation29_spill] sm:$0xff] %v2777_v41  ;;  %v2785_v42 = vld [vmem:[#allocation3 + $0x20] sm:$0xff] }
 0x1ad   :  { %698 = vmatmul.f32.vlgmr.msrb.gmra.mxu0 %v674_v43  ;;  %718 = vmatmul.f32.vlgmr.msra.gmra.mxu1 %v674_v43  ;;  %3263 = vst [vmem:[#allocation19_spill] sm:$0xff] %v2785_v42 }
 0x1ae   :  { %738 = vmatmul.f32.vlgmr.msra.gmra.mxu2 %v674_v43  ;;  %758 = vmatmul.f32.vlgmr.msra.gmra.mxu3 %v674_v43 }
 0x1af   :  { %990 = vmatpush.msrb.mxu0 %v2627_v53  ;;  %1010 = vmatpush.msra.mxu1 %v2630_v45 }
 0x1b0   :  { %1030 = vmatpush.msra.mxu2 %v2633_v46  ;;  %1050 = vmatpush.msra.mxu3 %v2636_v47 }
 0x1b1   :  { %991 = vmatpush.msrb.mxu0 %v2639_v48  ;;  %1011 = vmatpush.msra.mxu1 %v2642_v49 }
 0x1b2   :  { %1031 = vmatpush.msra.mxu2 %v2645_v50  ;;  %1051 = vmatpush.msra.mxu3 %v2648_v51 }
 0x1b3   :  { %992 = vmatpush.msrb.mxu0 %v2651_v52  ;;  %1012 = vmatpush.msra.mxu1 %v2654_v55 }
 0x1b4   :  { %1032 = vmatpush.msra.mxu2 %v2657_v56  ;;  %1052 = vmatpush.msra.mxu3 %v2660_v18 }
 0x1b5   :  { %993 = vmatpush.msrb.mxu0 %v2663_v61  ;;  %1013 = vmatpush.msra.mxu1 %v2666_v8 }
 0x1b6   :  { %1033 = vmatpush.msra.mxu2 %v2669_v11  ;;  %1053 = vmatpush.msra.mxu3 %v2672_v12 }
 0x1b7   :  { %994 = vmatpush.msrb.mxu0 %v2675_v31  ;;  %1014 = vmatpush.msra.mxu1 %v2678_v10 }
 0x1b8   :  { %1034 = vmatpush.msra.mxu2 %v2681_v44  ;;  %1054 = vmatpush.msra.mxu3 %v2684_v58 }
 0x1b9   :  { %995 = vmatpush.msrb.mxu0 %v2687_v62  ;;  %1015 = vmatpush.msra.mxu1 %v2690_v60 }
 0x1ba   :  { %1035 = vmatpush.msra.mxu2 %v2693_v59  ;;  %1055 = vmatpush.msra.mxu3 %v2696_v0 }
 0x1bb   :  { %996 = vmatpush.msrb.mxu0 %v2699_v7  ;;  %1016 = vmatpush.msra.mxu1 %v2702_v5 }
 0x1bc   :  { %1036 = vmatpush.msra.mxu2 %v2705_v1  ;;  %1056 = vmatpush.msra.mxu3 %v2708_v3 }
 0x1bd   :  { %997 = vmatpush.msrb.mxu0 %v2711_v4  ;;  %1017 = vmatpush.msra.mxu1 %v2714_v54 }
 0x1be   :  { %1037 = vmatpush.msra.mxu2 %v2717_v6  ;;  %1057 = vmatpush.msra.mxu3 %v2720_v57 }
 0x1bf   :  { %998 = vmatpush.msrb.mxu0 %v2723_v2  ;;  %1018 = vmatpush.msra.mxu1 %v2726_v63 }
 0x1c0   :  { %1038 = vmatpush.msra.mxu2 %v2729_v9  ;;  %1058 = vmatpush.msra.mxu3 %v2732_v13 }
 0x1c1   :  { %999 = vmatpush.msrb.mxu0 %v2735_v14  ;;  %1019 = vmatpush.msra.mxu1 %v2738_v15 }
 0x1c2   :  { %1039 = vmatpush.msra.mxu2 %v2741_v16  ;;  %1059 = vmatpush.msra.mxu3 %v2744_v17 }
 0x1c3   :  { %1000 = vmatpush.msrb.mxu0 %v2747_v19  ;;  %1020 = vmatpush.msra.mxu1 %v2750_v21 }
 0x1c4   :  { %1040 = vmatpush.msra.mxu2 %v2753_v22  ;;  %1060 = vmatpush.msra.mxu3 %v2756_v23 }
 0x1c5   :  { %1001 = vmatpush.msrb.mxu0 %v2759_v27  ;;  %1021 = vmatpush.msra.mxu1 %v2762_v30 }
 0x1c6   :  { %1041 = vmatpush.msra.mxu2 %v3228_v20  ;;  %1061 = vmatpush.msra.mxu3 %v2766_v35  ;;  %v2780_v20 = vld [vmem:[#allocation3 + $0x48] sm:$0xff] }
 0x1c7   :  { %1002 = vmatpush.msrb.mxu0 %v2769_v39  ;;  %1022 = vmatpush.msra.mxu1 %v2772_v40  ;;  %3262 = vst [vmem:[#allocation26_spill] sm:$0xff] %v2780_v20 }
 0x1c8   :  { %1042 = vmatpush.msra.mxu2 %v3232_v24  ;;  %1062 = vmatpush.msra.mxu3 %v3233_v25  ;;  %v2791_v24 = vld [vmem:[#allocation3] sm:$0xff] }
 0x1c9   :  { %1003 = vmatpush.msrb.mxu0 %v2777_v41  ;;  %1023 = vmatpush.msra.mxu1 %v2780_v20  ;;  %3264 = vst [vmem:[#allocation25_spill] sm:$0xff] %v2791_v24  ;;  %v3267_v41 = vld [vmem:[#allocation48_spill] sm:$0xff] }
 0x1ca   :  { %1043 = vmatpush.msra.mxu2 %v3236_v28  ;;  %1063 = vmatpush.msra.mxu3 %v3237_v29  ;;  %v3265_v29 = vld [vmem:[#allocation41_spill] sm:$0xff] }
 0x1cb   :  { %1004 = vmatpush.msrb.mxu0 %v2785_v42  ;;  %1024 = vmatpush.msra.mxu1 %v3239_v32  ;;  %v3266_v42 = vld [vmem:[#allocation46_spill] sm:$0xff] }
 0x1cc   :  { %1044 = vmatpush.msra.mxu2 %v3240_v33  ;;  %1064 = vmatpush.msra.mxu3 %v3241_v34 }
 0x1cd   :  { %1005 = vmatpush.msrb.mxu0 %v2791_v24  ;;  %1025 = vmatpush.msra.mxu1 %v3243_v36 }
 0x1ce   :  { %1045 = vmatpush.msra.mxu2 %v3244_v37  ;;  %1065 = vmatpush.msra.mxu3 %v3245_v38 }
 0x22a   :  { %v699_v25 = vpop.f32.mrf.mxu0  ;;  %v719_v28 = vpop.f32.mrf.mxu1 }
 0x22b   :  { %v762_v43 = vadd.f32 %v699_v25, %v3265_v29  ;;  %v763_v32 = vadd.f32 %v719_v28, %v3266_v42  ;;  %v3268_v42 = vld [vmem:[#allocation47_spill] sm:$0xff] }
 0x22d   :  { %v1703_v20 = vmul.f32 -1.442695, %v762_v43  ;;  %v1704_v33 = vmul.f32 -1.442695, %v763_v32 }
 0x22f   :  { %1768 = vpow2.f32 %v1703_v20 }
 0x230   :  { %1770 = vpow2.f32 %v1704_v33 }
 0x231   :  { %v759_v34 = vpop.f32.mrf.mxu3  ;;  %v739_v38 = vpop.f32.mrf.mxu2 }
 0x232   :  { %v765_v40 = vadd.f32 %v759_v34, %v3267_v41  ;;  %v764_v28 = vadd.f32 %v739_v38, %v3268_v42 }
 0x234   :  { %v1705_v24 = vmul.f32 -1.442695, %v765_v40 }
 0x235   :  { %v1769_v39 = vpop.eup %1768 }
 0x236   :  { %v1771_v36 = vpop.eup %1770  ;;  %v769_v35 = vadd.f32 1.0, %v1769_v39  ;;  %1772 = vpow2.f32 %v1705_v24 }
 0x237   :  { %v788_v37 = vadd.f32 1.0, %v1771_v36 }
 0x238   :  { %1774 = vrcp.f32 %v769_v35  ;;  %v781_v40 = vand.u32 2147483648, %v769_v35  ;;  %v779_v24 = vand.u32 2147483647, %v769_v35  ;;  %vm775_vm11 = vweird.f32 %v769_v35 }
 0x239   :  { %1776 = vrcp.f32 %v788_v37  ;;  %v800_v34 = vand.u32 2147483648, %v788_v37  ;;  %v798_v27 = vand.u32 2147483647, %v788_v37  ;;  %vm794_vm12 = vweird.f32 %v788_v37 }
 0x23a   :  { %v782_v38 = vor.u32 1.1754944e-38, %v781_v40  ;;  %vm780_vm15 = vcmp.eq.f32.partialorder %v779_v24, 8.507059e+37 }
 0x23b   :  { %vm799_vm0 = vcmp.eq.f32.partialorder %v798_v27, 8.507059e+37 }
 0x23c   :  { %v1773_v30 = vpop.eup %1772 }
 0x23d   :  { %v808_v25 = vadd.f32 1.0, %v1773_v30 }
 0x23e   :  { %v1775_v29 = vpop.eup %1774 }
 0x23f   :  { %v1777_v43 = vpop.eup %1776  ;;  %v771_v20 = vmul.f32 %v1775_v29, %v769_v35  ;;  %1778 = vrcp.f32 %v808_v25  ;;  %vm776_vm9 = vweird.f32 %v1775_v29  ;;  %v820_v40 = vand.u32 2147483648, %v808_v25 }
 0x240   :  { %v790_v32 = vmul.f32 %v1777_v43, %v788_v37  ;;  %1780 = vtanh.f32 %v764_v28  ;;  %vm795_vm10 = vweird.f32 %v1777_v43  ;;  %vm777_vm13 = vmor %vm775_vm11, %vm776_vm9  ;;  %vm814_vm2 = vweird.f32 %v808_v25 }
 0x241   :  { %v772_v33 = vsub.f32 1.0, %v771_v20  ;;  %vm796_vm14 = vmor %vm794_vm12, %vm795_vm10  ;;  %v801_v20 = vor.u32 1.1754944e-38, %v800_v34  ;;  %v821_v24 = vor.u32 1.1754944e-38, %v820_v40  ;;  %v3287_v40 = vld [vmem:[#allocation19_spill] sm:$0xff] }
 0x242   :  { %v791_v41 = vsub.f32 1.0, %v790_v32 }
 0x243   :  { %v773_v39 = vmul.f32 %v1775_v29, %v772_v33 }
 0x244   :  { %v792_v36 = vmul.f32 %v1777_v43, %v791_v41 }
 0x245   :  { %v1779_v23 = vpop.eup %1778  ;;  %v774_v30 = vadd.f32 %v1775_v29, %v773_v39 }
 0x246   :  { %v793_v42 = vadd.f32 %v1777_v43, %v792_v36  ;;  %v810_v22 = vmul.f32 %v1779_v23, %v808_v25  ;;  %v1781_v28 = vpop.eup %1780  ;;  %vm815_vm1 = vweird.f32 %v1779_v23  ;;  %v3276_v36 = vld [vmem:[#allocation24_spill] sm:$0xff] }
 0x247   :  { %v778_v32 = vsel %vm777_vm13, %v1775_v29, %v774_v30  ;;  %v818_v29 = vand.u32 2147483647, %v808_v25  ;;  %vm816_vm3 = vmor %vm814_vm2, %vm815_vm1  ;;  %v3275_v25 = vld [vmem:[#allocation17_spill] sm:$0xff] }
 0x248   :  { %v783_v21 = vsel %vm780_vm15, %v782_v38, %v778_v32  ;;  %v797_v33 = vsel %vm796_vm14, %v1777_v43, %v793_v42  ;;  %v811_v19 = vsub.f32 1.0, %v810_v22  ;;  %v2851_v30 = vld [vmem:[#allocation3 + $0x90] sm:$0xff]  ;;  %v3278_v38 = vld [vmem:[#allocation22_spill] sm:$0xff]  ;;  %v3279_v42 = vld [vmem:[#allocation16_spill] sm:$0xff] }
 0x249   :  { %v802_v41 = vsel %vm799_vm0, %v801_v20, %v797_v33  ;;  %v825_v17 = vmul.f32 %v1781_v28, %v783_v21  ;;  %vm819_vm4 = vcmp.eq.f32.partialorder %v818_v29, 8.507059e+37  ;;  %v3273_v21 = vld [vmem:[#allocation18_spill] sm:$0xff]  ;;  %3277 = vst [vmem:[#allocation32_spill] sm:$0xff] %v2851_v30  ;;  %v3280_v20 = vld [vmem:[#allocation21_spill] sm:$0xff]  ;;  %v2872_v29 = vld [vmem:[#allocation3 + $0x28] sm:$0xff] }
 0x24a   :  { %v824_v16 = vmul.f32 %v802_v41, %v2624_v26  ;;  %v812_v39 = vmul.f32 %v1779_v23, %v811_v19  ;;  %v3269_v26 = vld [vmem:[#allocation14_spill] sm:$0xff]  ;;  %v3272_v19 = vld [vmem:[#allocation20_spill] sm:$0xff]  ;;  %v2857_v32 = vld [vmem:[#allocation3 + $0x70] sm:$0xff]  ;;  %3288 = vst [vmem:[#allocation33_spill] sm:$0xff] %v2872_v29 }
 0x24b   :  { %3281 = vst [vmem:[#allocation30_spill] sm:$0xff] %v2857_v32  ;;  %v2860_v28 = vld [vmem:[#allocation3 + $0x78] sm:$0xff]  ;;  %v3283_v33 = vld [vmem:[#allocation29_spill] sm:$0xff] }
 0x24c   :  { %v2802_v35 = vadd.f32 %v825_v17, %v824_v16  ;;  %v813_v37 = vadd.f32 %v1779_v23, %v812_v39  ;;  %v3270_v16 = vld [vmem:[#allocation12_spill] sm:$0xff]  ;;  %v3271_v17 = vld [vmem:[#allocation13_spill] sm:$0xff]  ;;  %3282 = vst [vmem:[#allocation23_spill] sm:$0xff] %v2860_v28  ;;  %v3284_v41 = vld [vmem:[#allocation26_spill] sm:$0xff] }
 0x24d   :  { %v2865_v39 = vld [vmem:[#allocation3 + $0x50] sm:$0xff] }
 0x24e   :  { %1782 = vtanh.f32 %v2802_v35  ;;  %v817_v34 = vsel %vm816_vm3, %v1779_v23, %v813_v37  ;;  %v3274_v23 = vld [vmem:[#allocation15_spill] sm:$0xff]  ;;  %3285 = vst [vmem:[#allocation28_spill] sm:$0xff] %v2865_v39  ;;  %v2868_v37 = vld [vmem:[#allocation3 + $0x58] sm:$0xff] }
 0x24f   :  { %v822_v22 = vsel %vm819_vm4, %v821_v24, %v817_v34  ;;  %3286 = vst [vmem:[#allocation34_spill] sm:$0xff] %v2868_v37  ;;  %v2875_v34 = vld [vmem:[#allocation3 + $0x30] sm:$0xff]  ;;  %v2878_v24 = vld [vmem:[#allocation3 + $0x38] sm:$0xff] }
 0x250   :  { %3289 = vst [vmem:[#allocation27_spill] sm:$0xff] %v2875_v34 }
 0x251   :  { %3290 = vst [vmem:[#allocation31_spill] sm:$0xff] %v2878_v24 }
 0x254   :  { %v1783_v27 = vpop.eup %1782 }
 0x255   :  { %v828_v43 = vmul.f32 %v1783_v27, %v822_v22  ;;  %v3291_v27 = vld [vmem:[#allocation25_spill] sm:$0xff]  ;;  %v2882_v22 = vld [vmem:[#allocation3 + $0x8] sm:$0xff] }
 0x256   :  { %3292 = vst [vmem:[#allocation36_spill] sm:$0xff] %v2882_v22 }
 0x257   :  { %852 = vmatmul.f32.vlgmr.msra.gmra.mxu0 %v828_v43  ;;  %872 = vmatmul.f32.vlgmr.msrb.gmra.mxu1 %v828_v43 }
 0x258   :  { %892 = vmatmul.f32.vlgmr.msrb.gmra.mxu2 %v828_v43  ;;  %912 = vmatmul.f32.vlgmr.msrb.gmra.mxu3 %v828_v43  ;;  %v2885_v43 = vld [vmem:[#allocation3 + $0x10] sm:$0xff] }
 0x259   :  { %1144 = vmatpush.msra.mxu0 %v2627_v53  ;;  %1164 = vmatpush.msrb.mxu1 %v2630_v45  ;;  %3293 = vst [vmem:[#allocation35_spill] sm:$0xff] %v2885_v43 }
 0x25a   :  { %1184 = vmatpush.msrb.mxu2 %v2633_v46  ;;  %1204 = vmatpush.msrb.mxu3 %v2636_v47 }
 0x25b   :  { %1145 = vmatpush.msra.mxu0 %v2639_v48  ;;  %1165 = vmatpush.msrb.mxu1 %v2642_v49 }
 0x25c   :  { %1185 = vmatpush.msrb.mxu2 %v2645_v50  ;;  %1205 = vmatpush.msrb.mxu3 %v2648_v51 }
 0x25d   :  { %1146 = vmatpush.msra.mxu0 %v2651_v52  ;;  %1166 = vmatpush.msrb.mxu1 %v2654_v55 }
 0x25e   :  { %1186 = vmatpush.msrb.mxu2 %v2657_v56  ;;  %1206 = vmatpush.msrb.mxu3 %v2660_v18 }
 0x25f   :  { %1147 = vmatpush.msra.mxu0 %v2663_v61  ;;  %1167 = vmatpush.msrb.mxu1 %v2666_v8 }
 0x260   :  { %1187 = vmatpush.msrb.mxu2 %v2669_v11  ;;  %1207 = vmatpush.msrb.mxu3 %v2672_v12 }
 0x261   :  { %1148 = vmatpush.msra.mxu0 %v2675_v31  ;;  %1168 = vmatpush.msrb.mxu1 %v2678_v10 }
 0x262   :  { %1188 = vmatpush.msrb.mxu2 %v2681_v44  ;;  %1208 = vmatpush.msrb.mxu3 %v2684_v58 }
 0x263   :  { %1149 = vmatpush.msra.mxu0 %v2687_v62  ;;  %1169 = vmatpush.msrb.mxu1 %v2690_v60 }
 0x264   :  { %1189 = vmatpush.msrb.mxu2 %v2693_v59  ;;  %1209 = vmatpush.msrb.mxu3 %v2696_v0 }
 0x265   :  { %1150 = vmatpush.msra.mxu0 %v2699_v7  ;;  %1170 = vmatpush.msrb.mxu1 %v2702_v5 }
 0x266   :  { %1190 = vmatpush.msrb.mxu2 %v2705_v1  ;;  %1210 = vmatpush.msrb.mxu3 %v2708_v3 }
 0x267   :  { %1151 = vmatpush.msra.mxu0 %v2711_v4  ;;  %1171 = vmatpush.msrb.mxu1 %v2714_v54 }
 0x268   :  { %1191 = vmatpush.msrb.mxu2 %v2717_v6  ;;  %1211 = vmatpush.msrb.mxu3 %v2720_v57 }
 0x269   :  { %1152 = vmatpush.msra.mxu0 %v2723_v2  ;;  %1172 = vmatpush.msrb.mxu1 %v2726_v63 }
 0x26a   :  { %1192 = vmatpush.msrb.mxu2 %v2729_v9  ;;  %1212 = vmatpush.msrb.mxu3 %v2732_v13 }
 0x26b   :  { %1153 = vmatpush.msra.mxu0 %v2735_v14  ;;  %1173 = vmatpush.msrb.mxu1 %v2738_v15 }
 0x26c   :  { %1193 = vmatpush.msrb.mxu2 %v3269_v26  ;;  %1213 = vmatpush.msrb.mxu3 %v3270_v16 }
 0x26d   :  { %1154 = vmatpush.msra.mxu0 %v3271_v17  ;;  %1174 = vmatpush.msrb.mxu1 %v3272_v19 }
 0x26e   :  { %1194 = vmatpush.msrb.mxu2 %v3273_v21  ;;  %1214 = vmatpush.msrb.mxu3 %v3274_v23 }
 0x26f   :  { %1155 = vmatpush.msra.mxu0 %v3275_v25  ;;  %1175 = vmatpush.msrb.mxu1 %v3276_v36 }
 0x270   :  { %1195 = vmatpush.msrb.mxu2 %v2851_v30  ;;  %1215 = vmatpush.msrb.mxu3 %v3278_v38 }
 0x271   :  { %1156 = vmatpush.msra.mxu0 %v3279_v42  ;;  %1176 = vmatpush.msrb.mxu1 %v3280_v20 }
 0x272   :  { %1196 = vmatpush.msrb.mxu2 %v2857_v32  ;;  %1216 = vmatpush.msrb.mxu3 %v2860_v28 }
 0x273   :  { %1157 = vmatpush.msra.mxu0 %v3283_v33  ;;  %1177 = vmatpush.msrb.mxu1 %v3284_v41  ;;  %v3296_v41 = vld [vmem:[#allocation49_spill] sm:$0xff] }
 0x274   :  { %1197 = vmatpush.msrb.mxu2 %v2865_v39  ;;  %1217 = vmatpush.msrb.mxu3 %v2868_v37  ;;  %v3295_v37 = vld [vmem:[#allocation45_spill] sm:$0xff] }
 0x275   :  { %1158 = vmatpush.msra.mxu0 %v3287_v40  ;;  %1178 = vmatpush.msrb.mxu1 %v2872_v29  ;;  %v2888_v40 = vld [vmem:[#allocation3 + $0x18] sm:$0xff] }
 0x276   :  { %1198 = vmatpush.msrb.mxu2 %v2875_v34  ;;  %1218 = vmatpush.msrb.mxu3 %v2878_v24  ;;  %3294 = vst [vmem:[#allocation40_spill] sm:$0xff] %v2888_v40 }
 0x277   :  { %1159 = vmatpush.msra.mxu0 %v3291_v27  ;;  %1179 = vmatpush.msrb.mxu1 %v2882_v22  ;;  %v3297_v22 = vld [vmem:[#allocation52_spill] sm:$0xff] }
 0x278   :  { %1199 = vmatpush.msrb.mxu2 %v2885_v43  ;;  %1219 = vmatpush.msrb.mxu3 %v2888_v40 }
 0x2d4   :  { %v853_v29 = vpop.f32.mrf.mxu0  ;;  %v873_v34 = vpop.f32.mrf.mxu1 }
 0x2d5   :  { %v916_v39 = vadd.f32 %v853_v29, %v3295_v37  ;;  %v917_v24 = vadd.f32 %v873_v34, %v3296_v41  ;;  %v3298_v41 = vld [vmem:[#allocation51_spill] sm:$0xff] }
 0x2d7   :  { %v1706_v33 = vmul.f32 -1.442695, %v916_v39  ;;  %v1707_v27 = vmul.f32 -1.442695, %v917_v24 }
 0x2d9   :  { %1784 = vpow2.f32 %v1706_v33 }
 0x2da   :  { %1786 = vpow2.f32 %v1707_v27 }
 0x2db   :  { %v913_v28 = vpop.f32.mrf.mxu3  ;;  %v893_v40 = vpop.f32.mrf.mxu2 }
 0x2dc   :  { %v919_v32 = vadd.f32 %v913_v28, %v3297_v22  ;;  %v918_v39 = vadd.f32 %v893_v40, %v3298_v41 }
 0x2de   :  { %v1708_v20 = vmul.f32 -1.442695, %v919_v32 }
 0x2df   :  { %v1785_v42 = vpop.eup %1784 }
 0x2e0   :  { %v1787_v43 = vpop.eup %1786  ;;  %v923_v38 = vadd.f32 1.0, %v1785_v42  ;;  %1788 = vpow2.f32 %v1708_v20 }
 0x2e1   :  { %v942_v30 = vadd.f32 1.0, %v1787_v43 }
 0x2e2   :  { %1790 = vrcp.f32 %v923_v38  ;;  %v935_v32 = vand.u32 2147483648, %v923_v38  ;;  %v933_v20 = vand.u32 2147483647, %v923_v38  ;;  %vm929_vm7 = vweird.f32 %v923_v38 }
 0x2e3   :  { %1792 = vrcp.f32 %v942_v30  ;;  %v954_v22 = vand.u32 2147483648, %v942_v30  ;;  %v952_v25 = vand.u32 2147483647, %v942_v30  ;;  %vm948_vm8 = vweird.f32 %v942_v30 }
 0x2e4   :  { %v936_v40 = vor.u32 1.1754944e-38, %v935_v32  ;;  %vm934_vm11 = vcmp.eq.f32.partialorder %v933_v20, 8.507059e+37 }
 0x2e5   :  { %vm953_vm12 = vcmp.eq.f32.partialorder %v952_v25, 8.507059e+37 }
 0x2e6   :  { %v1789_v36 = vpop.eup %1788 }
 0x2e7   :  { %v962_v37 = vadd.f32 1.0, %v1789_v36 }
 0x2e8   :  { %v1791_v29 = vpop.eup %1790 }
 0x2e9   :  { %v1793_v34 = vpop.eup %1792  ;;  %v925_v33 = vmul.f32 %v1791_v29, %v923_v38  ;;  %1794 = vrcp.f32 %v962_v37  ;;  %vm930_vm5 = vweird.f32 %v1791_v29  ;;  %v974_v32 = vand.u32 2147483648, %v962_v37 }
 0x2ea   :  { %v944_v24 = vmul.f32 %v1793_v34, %v942_v30  ;;  %1796 = vtanh.f32 %v918_v39  ;;  %vm949_vm6 = vweird.f32 %v1793_v34  ;;  %vm931_vm9 = vmor %vm929_vm7, %vm930_vm5  ;;  %vm968_vm14 = vweird.f32 %v962_v37 }
 0x2eb   :  { %v926_v27 = vsub.f32 1.0, %v925_v33  ;;  %vm950_vm10 = vmor %vm948_vm8, %vm949_vm6  ;;  %v955_v33 = vor.u32 1.1754944e-38, %v954_v22  ;;  %v975_v20 = vor.u32 1.1754944e-38, %v974_v32  ;;  %v3317_v32 = vld [vmem:[#allocation19_spill] sm:$0xff] }
 0x2ec   :  { %v945_v28 = vsub.f32 1.0, %v944_v24 }
 0x2ed   :  { %v927_v42 = vmul.f32 %v1791_v29, %v926_v27 }
 0x2ee   :  { %v946_v43 = vmul.f32 %v1793_v34, %v945_v28 }
 0x2ef   :  { %v1795_v23 = vpop.eup %1794  ;;  %v928_v36 = vadd.f32 %v1791_v29, %v927_v42 }
 0x2f0   :  { %v947_v41 = vadd.f32 %v1793_v34, %v946_v43  ;;  %v964_v21 = vmul.f32 %v1795_v23, %v962_v37  ;;  %v1797_v39 = vpop.eup %1796  ;;  %vm969_vm13 = vweird.f32 %v1795_v23  ;;  %v3306_v43 = vld [vmem:[#allocation24_spill] sm:$0xff] }
 0x2f1   :  { %v932_v24 = vsel %vm931_vm9, %v1791_v29, %v928_v36  ;;  %v972_v29 = vand.u32 2147483647, %v962_v37  ;;  %vm970_vm15 = vmor %vm968_vm14, %vm969_vm13  ;;  %v3305_v37 = vld [vmem:[#allocation17_spill] sm:$0xff]  ;;  %v3307_v36 = vld [vmem:[#allocation32_spill] sm:$0xff] }
 0x2f2   :  { %v937_v19 = vsel %vm934_vm11, %v936_v40, %v932_v24  ;;  %v951_v27 = vsel %vm950_vm10, %v1793_v34, %v947_v41  ;;  %v965_v17 = vsub.f32 1.0, %v964_v21  ;;  %v3308_v40 = vld [vmem:[#allocation22_spill] sm:$0xff]  ;;  %v3309_v41 = vld [vmem:[#allocation16_spill] sm:$0xff] }
 0x2f3   :  { %v956_v28 = vsel %vm953_vm12, %v955_v33, %v951_v27  ;;  %v979_v16 = vmul.f32 %v1797_v39, %v937_v19  ;;  %vm973_vm0 = vcmp.eq.f32.partialorder %v972_v29, 8.507059e+37  ;;  %v3303_v19 = vld [vmem:[#allocation18_spill] sm:$0xff]  ;;  %v3310_v33 = vld [vmem:[#allocation21_spill] sm:$0xff]  ;;  %v3312_v39 = vld [vmem:[#allocation23_spill] sm:$0xff] }
 0x2f4   :  { %v978_v26 = vmul.f32 %v956_v28, %v2802_v35  ;;  %v966_v42 = vmul.f32 %v1795_v23, %v965_v17  ;;  %v3299_v35 = vld [vmem:[#allocation14_spill] sm:$0xff]  ;;  %v3302_v17 = vld [vmem:[#allocation20_spill] sm:$0xff]  ;;  %v3313_v27 = vld [vmem:[#allocation29_spill] sm:$0xff] }
 0x2f5   :  { %v3311_v24 = vld [vmem:[#allocation30_spill] sm:$0xff]  ;;  %v3318_v29 = vld [vmem:[#allocation33_spill] sm:$0xff] }
 0x2f6   :  { %v2896_v38 = vadd.f32 %v979_v16, %v978_v26  ;;  %v967_v30 = vadd.f32 %v1795_v23, %v966_v42  ;;  %v3300_v26 = vld [vmem:[#allocation12_spill] sm:$0xff]  ;;  %v3301_v16 = vld [vmem:[#allocation13_spill] sm:$0xff]  ;;  %v3314_v28 = vld [vmem:[#allocation26_spill] sm:$0xff] }
 0x2f7   :  { %v3315_v42 = vld [vmem:[#allocation28_spill] sm:$0xff] }
 0x2f8   :  { %1798 = vtanh.f32 %v2896_v38  ;;  %v971_v22 = vsel %vm970_vm15, %v1795_v23, %v967_v30  ;;  %v3304_v23 = vld [vmem:[#allocation15_spill] sm:$0xff]  ;;  %v3316_v30 = vld [vmem:[#allocation34_spill] sm:$0xff] }
 0x2f9   :  { %v976_v21 = vsel %vm973_vm0, %v975_v20, %v971_v22  ;;  %v3319_v22 = vld [vmem:[#allocation27_spill] sm:$0xff] }
 0x2fa   :  { %v3320_v20 = vld [vmem:[#allocation31_spill] sm:$0xff] }
 0x2fe   :  { %v1799_v25 = vpop.eup %1798 }
 0x2ff   :  { %v982_v34 = vmul.f32 %v1799_v25, %v976_v21  ;;  %v3321_v25 = vld [vmem:[#allocation25_spill] sm:$0xff]  ;;  %v3322_v21 = vld [vmem:[#allocation36_spill] sm:$0xff] }
 0x301   :  { %1006 = vmatmul.f32.vlgmr.msrb.gmra.mxu0 %v982_v34  ;;  %1026 = vmatmul.f32.vlgmr.msra.gmra.mxu1 %v982_v34 }
 0x302   :  { %1046 = vmatmul.f32.vlgmr.msra.gmra.mxu2 %v982_v34  ;;  %1066 = vmatmul.f32.vlgmr.msra.gmra.mxu3 %v982_v34  ;;  %v3323_v34 = vld [vmem:[#allocation35_spill] sm:$0xff] }
 0x303   :  { %1298 = vmatpush.msrb.mxu0 %v2627_v53  ;;  %1318 = vmatpush.msra.mxu1 %v2630_v45 }
 0x304   :  { %1338 = vmatpush.msra.mxu2 %v2633_v46  ;;  %1358 = vmatpush.msra.mxu3 %v2636_v47 }
 0x305   :  { %1299 = vmatpush.msrb.mxu0 %v2639_v48  ;;  %1319 = vmatpush.msra.mxu1 %v2642_v49 }
 0x306   :  { %1339 = vmatpush.msra.mxu2 %v2645_v50  ;;  %1359 = vmatpush.msra.mxu3 %v2648_v51 }
 0x307   :  { %1300 = vmatpush.msrb.mxu0 %v2651_v52  ;;  %1320 = vmatpush.msra.mxu1 %v2654_v55 }
 0x308   :  { %1340 = vmatpush.msra.mxu2 %v2657_v56  ;;  %1360 = vmatpush.msra.mxu3 %v2660_v18 }
 0x309   :  { %1301 = vmatpush.msrb.mxu0 %v2663_v61  ;;  %1321 = vmatpush.msra.mxu1 %v2666_v8 }
 0x30a   :  { %1341 = vmatpush.msra.mxu2 %v2669_v11  ;;  %1361 = vmatpush.msra.mxu3 %v2672_v12 }
 0x30b   :  { %1302 = vmatpush.msrb.mxu0 %v2675_v31  ;;  %1322 = vmatpush.msra.mxu1 %v2678_v10 }
 0x30c   :  { %1342 = vmatpush.msra.mxu2 %v2681_v44  ;;  %1362 = vmatpush.msra.mxu3 %v2684_v58 }
 0x30d   :  { %1303 = vmatpush.msrb.mxu0 %v2687_v62  ;;  %1323 = vmatpush.msra.mxu1 %v2690_v60 }
 0x30e   :  { %1343 = vmatpush.msra.mxu2 %v2693_v59  ;;  %1363 = vmatpush.msra.mxu3 %v2696_v0 }
 0x30f   :  { %1304 = vmatpush.msrb.mxu0 %v2699_v7  ;;  %1324 = vmatpush.msra.mxu1 %v2702_v5 }
 0x310   :  { %1344 = vmatpush.msra.mxu2 %v2705_v1  ;;  %1364 = vmatpush.msra.mxu3 %v2708_v3 }
 0x311   :  { %1305 = vmatpush.msrb.mxu0 %v2711_v4  ;;  %1325 = vmatpush.msra.mxu1 %v2714_v54 }
 0x312   :  { %1345 = vmatpush.msra.mxu2 %v2717_v6  ;;  %1365 = vmatpush.msra.mxu3 %v2720_v57 }
 0x313   :  { %1306 = vmatpush.msrb.mxu0 %v2723_v2  ;;  %1326 = vmatpush.msra.mxu1 %v2726_v63 }
 0x314   :  { %1346 = vmatpush.msra.mxu2 %v2729_v9  ;;  %1366 = vmatpush.msra.mxu3 %v2732_v13 }
 0x315   :  { %1307 = vmatpush.msrb.mxu0 %v2735_v14  ;;  %1327 = vmatpush.msra.mxu1 %v2738_v15 }
 0x316   :  { %1347 = vmatpush.msra.mxu2 %v3299_v35  ;;  %1367 = vmatpush.msra.mxu3 %v3300_v26 }
 0x317   :  { %1308 = vmatpush.msrb.mxu0 %v3301_v16  ;;  %1328 = vmatpush.msra.mxu1 %v3302_v17 }
 0x318   :  { %1348 = vmatpush.msra.mxu2 %v3303_v19  ;;  %1368 = vmatpush.msra.mxu3 %v3304_v23 }
 0x319   :  { %1309 = vmatpush.msrb.mxu0 %v3305_v37  ;;  %1329 = vmatpush.msra.mxu1 %v3306_v43 }
 0x31a   :  { %1349 = vmatpush.msra.mxu2 %v3307_v36  ;;  %1369 = vmatpush.msra.mxu3 %v3308_v40 }
 0x31b   :  { %1310 = vmatpush.msrb.mxu0 %v3309_v41  ;;  %1330 = vmatpush.msra.mxu1 %v3310_v33 }
 0x31c   :  { %1350 = vmatpush.msra.mxu2 %v3311_v24  ;;  %1370 = vmatpush.msra.mxu3 %v3312_v39  ;;  %v3325_v39 = vld [vmem:[#allocation50_spill] sm:$0xff]  ;;  %v3326_v24 = vld [vmem:[#allocation53_spill] sm:$0xff] }
 0x31d   :  { %1311 = vmatpush.msrb.mxu0 %v3313_v27  ;;  %1331 = vmatpush.msra.mxu1 %v3314_v28  ;;  %v3324_v27 = vld [vmem:[#allocation40_spill] sm:$0xff] }
 0x31e   :  { %1351 = vmatpush.msra.mxu2 %v3315_v42  ;;  %1371 = vmatpush.msra.mxu3 %v3316_v30 }
 0x31f   :  { %1312 = vmatpush.msrb.mxu0 %v3317_v32  ;;  %1332 = vmatpush.msra.mxu1 %v3318_v29 }
 0x320   :  { %1352 = vmatpush.msra.mxu2 %v3319_v22  ;;  %1372 = vmatpush.msra.mxu3 %v3320_v20  ;;  %v3327_v20 = vld [vmem:[#allocation55_spill] sm:$0xff] }
 0x321   :  { %1313 = vmatpush.msrb.mxu0 %v3321_v25  ;;  %1333 = vmatpush.msra.mxu1 %v3322_v21 }
 0x322   :  { %1353 = vmatpush.msra.mxu2 %v3323_v34  ;;  %1373 = vmatpush.msra.mxu3 %v3324_v27 }
 0x37e   :  { %v1007_v28 = vpop.f32.mrf.mxu0  ;;  %v1027_v42 = vpop.f32.mrf.mxu1 }
 0x37f   :  { %v1070_v30 = vadd.f32 %v1007_v28, %v3325_v39  ;;  %v1071_v32 = vadd.f32 %v1027_v42, %v3326_v24  ;;  %v3328_v24 = vld [vmem:[#allocation54_spill] sm:$0xff] }
 0x381   :  { %v1709_v33 = vmul.f32 -1.442695, %v1070_v30  ;;  %v1710_v29 = vmul.f32 -1.442695, %v1071_v32 }
 0x383   :  { %1800 = vpow2.f32 %v1709_v33 }
 0x384   :  { %1802 = vpow2.f32 %v1710_v29 }
 0x385   :  { %v1067_v22 = vpop.f32.mrf.mxu3  ;;  %v1047_v27 = vpop.f32.mrf.mxu2 }
 0x386   :  { %v1073_v41 = vadd.f32 %v1067_v22, %v3327_v20  ;;  %v1072_v42 = vadd.f32 %v1047_v27, %v3328_v24 }
 0x388   :  { %v1711_v25 = vmul.f32 -1.442695, %v1073_v41 }
 0x389   :  { %v1801_v40 = vpop.eup %1800 }
 0x38a   :  { %v1803_v21 = vpop.eup %1802  ;;  %v1077_v36 = vadd.f32 1.0, %v1801_v40  ;;  %1804 = vpow2.f32 %v1711_v25 }
 0x38b   :  { %v1096_v34 = vadd.f32 1.0, %v1803_v21 }
 0x38c   :  { %1806 = vrcp.f32 %v1077_v36  ;;  %v1089_v41 = vand.u32 2147483648, %v1077_v36  ;;  %v1087_v25 = vand.u32 2147483647, %v1077_v36  ;;  %vm1083_vm3 = vweird.f32 %v1077_v36 }
 0x38d   :  { %1808 = vrcp.f32 %v1096_v34  ;;  %v1108_v20 = vand.u32 2147483648, %v1096_v34  ;;  %v1106_v37 = vand.u32 2147483647, %v1096_v34  ;;  %vm1102_vm4 = vweird.f32 %v1096_v34 }
 0x38e   :  { %v1090_v27 = vor.u32 1.1754944e-38, %v1089_v41  ;;  %vm1088_vm7 = vcmp.eq.f32.partialorder %v1087_v25, 8.507059e+37 }
 0x38f   :  { %vm1107_vm8 = vcmp.eq.f32.partialorder %v1106_v37, 8.507059e+37 }
 0x390   :  { %v1805_v43 = vpop.eup %1804 }
 0x391   :  { %v1116_v39 = vadd.f32 1.0, %v1805_v43 }
 0x392   :  { %v1807_v28 = vpop.eup %1806 }
 0x393   :  { %v1809_v30 = vpop.eup %1808  ;;  %v1079_v33 = vmul.f32 %v1807_v28, %v1077_v36  ;;  %1810 = vrcp.f32 %v1116_v39  ;;  %vm1084_vm1 = vweird.f32 %v1807_v28  ;;  %v1128_v41 = vand.u32 2147483648, %v1116_v39 }
 0x394   :  { %v1098_v32 = vmul.f32 %v1809_v30, %v1096_v34  ;;  %1812 = vtanh.f32 %v1072_v42  ;;  %vm1103_vm2 = vweird.f32 %v1809_v30  ;;  %vm1085_vm5 = vmor %vm1083_vm3, %vm1084_vm1  ;;  %vm1122_vm10 = vweird.f32 %v1116_v39 }
 0x395   :  { %v1080_v29 = vsub.f32 1.0, %v1079_v33  ;;  %vm1104_vm6 = vmor %vm1102_vm4, %vm1103_vm2  ;;  %v1109_v33 = vor.u32 1.1754944e-38, %v1108_v20  ;;  %v1129_v25 = vor.u32 1.1754944e-38, %v1128_v41 }
 0x396   :  { %v1099_v22 = vsub.f32 1.0, %v1098_v32 }
 0x397   :  { %v1081_v40 = vmul.f32 %v1807_v28, %v1080_v29 }
 0x398   :  { %v1100_v21 = vmul.f32 %v1809_v30, %v1099_v22 }
 0x399   :  { %v1811_v23 = vpop.eup %1810  ;;  %v1082_v43 = vadd.f32 %v1807_v28, %v1081_v40 }
 0x39a   :  { %v1101_v24 = vadd.f32 %v1809_v30, %v1100_v21  ;;  %v1118_v19 = vmul.f32 %v1811_v23, %v1116_v39  ;;  %v1813_v42 = vpop.eup %1812  ;;  %vm1123_vm9 = vweird.f32 %v1811_v23 }
 0x39b   :  { %v1086_v32 = vsel %vm1085_vm5, %v1807_v28, %v1082_v43  ;;  %v1126_v28 = vand.u32 2147483647, %v1116_v39  ;;  %vm1124_vm11 = vmor %vm1122_vm10, %vm1123_vm9  ;;  %v3358_v43 = vld [vmem:[#allocation57_spill] sm:$0xff] }
 0x39c   :  { %v1091_v17 = vsel %vm1088_vm7, %v1090_v27, %v1086_v32  ;;  %v1105_v29 = vsel %vm1104_vm6, %v1809_v30, %v1101_v24  ;;  %v1119_v16 = vsub.f32 1.0, %v1118_v19 }
 0x39d   :  { %v1110_v22 = vsel %vm1107_vm8, %v1109_v33, %v1105_v29  ;;  %v1133_v26 = vmul.f32 %v1813_v42, %v1091_v17  ;;  %vm1127_vm12 = vcmp.eq.f32.partialorder %v1126_v28, 8.507059e+37 }
 0x39e   :  { %v1132_v35 = vmul.f32 %v1110_v22, %v2896_v38  ;;  %v1120_v40 = vmul.f32 %v1811_v23, %v1119_v16 }
 0x3a0   :  { %v2968_v36 = vadd.f32 %v1133_v26, %v1132_v35  ;;  %v1121_v34 = vadd.f32 %v1811_v23, %v1120_v40 }
 0x3a2   :  { %1814 = vtanh.f32 %v2968_v36  ;;  %v1125_v20 = vsel %vm1124_vm11, %v1811_v23, %v1121_v34 }
 0x3a3   :  { %v1130_v19 = vsel %vm1127_vm12, %v1129_v25, %v1125_v20 }
 0x3a8   :  { %v1815_v37 = vpop.eup %1814 }
 0x3a9   :  { %v1136_v30 = vmul.f32 %v1815_v37, %v1130_v19 }
 0x3ab   :  { %1160 = vmatmul.f32.vlgmr.msra.gmra.mxu0 %v1136_v30  ;;  %1180 = vmatmul.f32.vlgmr.msrb.gmra.mxu1 %v1136_v30 }
 0x3ac   :  { %1200 = vmatmul.f32.vlgmr.msrb.gmra.mxu2 %v1136_v30  ;;  %1220 = vmatmul.f32.vlgmr.msrb.gmra.mxu3 %v1136_v30 }
 0x3ad   :  { %1452 = vmatpush.msra.mxu0 %v2627_v53  ;;  %1472 = vmatpush.msrb.mxu1 %v2630_v45  ;;  %v3329_v53 = vld [vmem:[#allocation14_spill] sm:$0xff]  ;;  %v3330_v45 = vld [vmem:[#allocation12_spill] sm:$0xff] }
 0x3ae   :  { %1492 = vmatpush.msrb.mxu2 %v2633_v46  ;;  %1512 = vmatpush.msrb.mxu3 %v2636_v47  ;;  %v3331_v46 = vld [vmem:[#allocation13_spill] sm:$0xff]  ;;  %v3332_v47 = vld [vmem:[#allocation20_spill] sm:$0xff] }
 0x3af   :  { %1453 = vmatpush.msra.mxu0 %v2639_v48  ;;  %1473 = vmatpush.msrb.mxu1 %v2642_v49  ;;  %v3333_v48 = vld [vmem:[#allocation18_spill] sm:$0xff]  ;;  %v3334_v49 = vld [vmem:[#allocation15_spill] sm:$0xff] }
 0x3b0   :  { %1493 = vmatpush.msrb.mxu2 %v2645_v50  ;;  %1513 = vmatpush.msrb.mxu3 %v2648_v51  ;;  %v3335_v50 = vld [vmem:[#allocation17_spill] sm:$0xff]  ;;  %v3336_v51 = vld [vmem:[#allocation24_spill] sm:$0xff] }
 0x3b1   :  { %1454 = vmatpush.msra.mxu0 %v2651_v52  ;;  %1474 = vmatpush.msrb.mxu1 %v2654_v55  ;;  %v3337_v52 = vld [vmem:[#allocation32_spill] sm:$0xff]  ;;  %v3338_v55 = vld [vmem:[#allocation22_spill] sm:$0xff] }
 0x3b2   :  { %1494 = vmatpush.msrb.mxu2 %v2657_v56  ;;  %1514 = vmatpush.msrb.mxu3 %v2660_v18  ;;  %v3339_v56 = vld [vmem:[#allocation16_spill] sm:$0xff]  ;;  %v3340_v18 = vld [vmem:[#allocation21_spill] sm:$0xff] }
 0x3b3   :  { %1455 = vmatpush.msra.mxu0 %v2663_v61  ;;  %1475 = vmatpush.msrb.mxu1 %v2666_v8  ;;  %v3341_v61 = vld [vmem:[#allocation30_spill] sm:$0xff]  ;;  %v3342_v8 = vld [vmem:[#allocation23_spill] sm:$0xff] }
 0x3b4   :  { %1495 = vmatpush.msrb.mxu2 %v2669_v11  ;;  %1515 = vmatpush.msrb.mxu3 %v2672_v12  ;;  %v3343_v11 = vld [vmem:[#allocation29_spill] sm:$0xff]  ;;  %v3344_v12 = vld [vmem:[#allocation26_spill] sm:$0xff] }
 0x3b5   :  { %1456 = vmatpush.msra.mxu0 %v2675_v31  ;;  %1476 = vmatpush.msrb.mxu1 %v2678_v10  ;;  %v3345_v31 = vld [vmem:[#allocation28_spill] sm:$0xff]  ;;  %v3346_v10 = vld [vmem:[#allocation34_spill] sm:$0xff] }
 0x3b6   :  { %1496 = vmatpush.msrb.mxu2 %v2681_v44  ;;  %1516 = vmatpush.msrb.mxu3 %v2684_v58  ;;  %v3347_v44 = vld [vmem:[#allocation19_spill] sm:$0xff]  ;;  %v3348_v58 = vld [vmem:[#allocation33_spill] sm:$0xff] }
 0x3b7   :  { %1457 = vmatpush.msra.mxu0 %v2687_v62  ;;  %1477 = vmatpush.msrb.mxu1 %v2690_v60  ;;  %v3349_v62 = vld [vmem:[#allocation27_spill] sm:$0xff] }
 0x3b8   :  { %1497 = vmatpush.msrb.mxu2 %v2693_v59  ;;  %1517 = vmatpush.msrb.mxu3 %v2696_v0  ;;  %v3350_v60 = vld [vmem:[#allocation31_spill] sm:$0xff]  ;;  %v3351_v59 = vld [vmem:[#allocation25_spill] sm:$0xff]  ;;  %v3352_v0 = vld [vmem:[#allocation36_spill] sm:$0xff] }
 0x3b9   :  { %1458 = vmatpush.msra.mxu0 %v2699_v7  ;;  %1478 = vmatpush.msrb.mxu1 %v2702_v5  ;;  %v3353_v7 = vld [vmem:[#allocation35_spill] sm:$0xff]  ;;  %v3354_v5 = vld [vmem:[#allocation40_spill] sm:$0xff] }
 0x3ba   :  { %1498 = vmatpush.msrb.mxu2 %v2705_v1  ;;  %1518 = vmatpush.msrb.mxu3 %v2708_v3 }
 0x3bb   :  { %1459 = vmatpush.msra.mxu0 %v2711_v4  ;;  %1479 = vmatpush.msrb.mxu1 %v2714_v54  ;;  %v3355_v4 = vld [vmem:[#allocation37_spill] sm:$0xff] }
 0x3bc   :  { %1499 = vmatpush.msrb.mxu2 %v2717_v6  ;;  %1519 = vmatpush.msrb.mxu3 %v2720_v57  ;;  %v3356_v6 = vld [vmem:[#allocation56_spill] sm:$0xff] }
 0x3bd   :  { %1460 = vmatpush.msra.mxu0 %v2723_v2  ;;  %1480 = vmatpush.msrb.mxu1 %v2726_v63 }
 0x3be   :  { %1500 = vmatpush.msrb.mxu2 %v2729_v9  ;;  %1520 = vmatpush.msrb.mxu3 %v2732_v13  ;;  %v3357_v13 = vld [vmem:[#allocation58_spill] sm:$0xff] }
 0x3bf   :  { %1461 = vmatpush.msra.mxu0 %v2735_v14  ;;  %1481 = vmatpush.msrb.mxu1 %v2738_v15 }
 0x3c0   :  { %1501 = vmatpush.msrb.mxu2 %v3329_v53  ;;  %1521 = vmatpush.msrb.mxu3 %v3330_v45 }
 0x3c1   :  { %1462 = vmatpush.msra.mxu0 %v3331_v46  ;;  %1482 = vmatpush.msrb.mxu1 %v3332_v47 }
 0x3c2   :  { %1502 = vmatpush.msrb.mxu2 %v3333_v48  ;;  %1522 = vmatpush.msrb.mxu3 %v3334_v49 }
 0x3c3   :  { %1463 = vmatpush.msra.mxu0 %v3335_v50  ;;  %1483 = vmatpush.msrb.mxu1 %v3336_v51 }
 0x3c4   :  { %1503 = vmatpush.msrb.mxu2 %v3337_v52  ;;  %1523 = vmatpush.msrb.mxu3 %v3338_v55 }
 0x3c5   :  { %1464 = vmatpush.msra.mxu0 %v3339_v56  ;;  %1484 = vmatpush.msrb.mxu1 %v3340_v18 }
 0x3c6   :  { %1504 = vmatpush.msrb.mxu2 %v3341_v61  ;;  %1524 = vmatpush.msrb.mxu3 %v3342_v8 }
 0x3c7   :  { %1465 = vmatpush.msra.mxu0 %v3343_v11  ;;  %1485 = vmatpush.msrb.mxu1 %v3344_v12 }
 0x3c8   :  { %1505 = vmatpush.msrb.mxu2 %v3345_v31  ;;  %1525 = vmatpush.msrb.mxu3 %v3346_v10 }
 0x3c9   :  { %1466 = vmatpush.msra.mxu0 %v3347_v44  ;;  %1486 = vmatpush.msrb.mxu1 %v3348_v58 }
 0x3ca   :  { %1506 = vmatpush.msrb.mxu2 %v3349_v62  ;;  %1526 = vmatpush.msrb.mxu3 %v3350_v60  ;;  %v3359_v60 = vld [vmem:[#allocation38_spill] sm:$0xff] }
 0x3cb   :  { %1467 = vmatpush.msra.mxu0 %v3351_v59  ;;  %1487 = vmatpush.msrb.mxu1 %v3352_v0  ;;  %v3360_v0 = vld [vmem:[#allocation59_spill] sm:$0xff] }
 0x3cc   :  { %1507 = vmatpush.msrb.mxu2 %v3353_v7  ;;  %1527 = vmatpush.msrb.mxu3 %v3354_v5 }
 0x428   :  { %v1161_v1 = vpop.f32.mrf.mxu0  ;;  %v1181_v3 = vpop.f32.mrf.mxu1 }
 0x429   :  { %v1224_v54 = vadd.f32 %v1161_v1, %v3355_v4  ;;  %v1225_v57 = vadd.f32 %v1181_v3, %v3356_v6  ;;  %v3361_v4 = vld [vmem:[#allocation61_spill] sm:$0xff] }
 0x42b   :  { %v1712_v2 = vmul.f32 -1.442695, %v1224_v54  ;;  %v1713_v63 = vmul.f32 -1.442695, %v1225_v57 }
 0x42d   :  { %1816 = vpow2.f32 %v1712_v2 }
 0x42e   :  { %1818 = vpow2.f32 %v1713_v63 }
 0x42f   :  { %v1221_v9 = vpop.f32.mrf.mxu3  ;;  %v1201_v17 = vpop.f32.mrf.mxu2 }
 0x430   :  { %v1227_v14 = vadd.f32 %v1221_v9, %v3357_v13  ;;  %v1226_v27 = vadd.f32 %v1201_v17, %v3358_v43 }
 0x432   :  { %v1714_v15 = vmul.f32 -1.442695, %v1227_v14 }
 0x433   :  { %v1817_v38 = vpop.eup %1816 }
 0x434   :  { %v1819_v35 = vpop.eup %1818  ;;  %v1231_v26 = vadd.f32 1.0, %v1817_v38  ;;  %1820 = vpow2.f32 %v1714_v15 }
 0x435   :  { %v1250_v16 = vadd.f32 1.0, %v1819_v35  ;;  %v3362_v35 = vld [vmem:[#allocation60_spill] sm:$0xff] }
 0x436   :  { %1822 = vrcp.f32 %v1231_v26  ;;  %v1243_v22 = vand.u32 2147483648, %v1231_v26  ;;  %v1241_v41 = vand.u32 2147483647, %v1231_v26  ;;  %vm1237_vm15 = vweird.f32 %v1231_v26 }
 0x437   :  { %1824 = vrcp.f32 %v1250_v16  ;;  %v1262_v40 = vand.u32 2147483648, %v1250_v16  ;;  %v1260_v20 = vand.u32 2147483647, %v1250_v16  ;;  %vm1256_vm0 = vweird.f32 %v1250_v16 }
 0x438   :  { %v1244_v19 = vor.u32 1.1754944e-38, %v1243_v22  ;;  %vm1242_vm3 = vcmp.eq.f32.partialorder %v1241_v41, 8.507059e+37 }
 0x439   :  { %v1263_v45 = vor.u32 1.1754944e-38, %v1262_v40  ;;  %vm1261_vm4 = vcmp.eq.f32.partialorder %v1260_v20, 8.507059e+37 }
 0x43a   :  { %v1821_v23 = vpop.eup %1820 }
 0x43b   :  { %v1270_v39 = vadd.f32 1.0, %v1821_v23 }
 0x43c   :  { %v1823_v21 = vpop.eup %1822 }
 0x43d   :  { %v1825_v24 = vpop.eup %1824  ;;  %v1233_v33 = vmul.f32 %v1823_v21, %v1231_v26  ;;  %1826 = vrcp.f32 %v1270_v39  ;;  %vm1238_vm13 = vweird.f32 %v1823_v21  ;;  %v1282_v8 = vand.u32 2147483648, %v1270_v39 }
 0x43e   :  { %v1252_v32 = vmul.f32 %v1825_v24, %v1250_v16  ;;  %1828 = vtanh.f32 %v1226_v27  ;;  %vm1257_vm14 = vweird.f32 %v1825_v24  ;;  %vm1239_vm1 = vmor %vm1237_vm15, %vm1238_vm13  ;;  %vm1276_vm6 = vweird.f32 %v1270_v39 }
 0x43f   :  { %v1234_v42 = vsub.f32 1.0, %v1233_v33  ;;  %vm1258_vm2 = vmor %vm1256_vm0, %vm1257_vm14  ;;  %v1280_v11 = vand.u32 2147483647, %v1270_v39  ;;  %v1283_v31 = vor.u32 1.1754944e-38, %v1282_v8 }
 0x440   :  { %v1253_v29 = vsub.f32 1.0, %v1252_v32 }
 0x441   :  { %v1235_v34 = vmul.f32 %v1823_v21, %v1234_v42  ;;  %vm1281_vm8 = vcmp.eq.f32.partialorder %v1280_v11, 8.507059e+37  ;;  %v1613_v11 = vld [vmem:[#allocation6 + $0x70] sm:$0xff] }
 0x442   :  { %v1254_v28 = vmul.f32 %v1825_v24, %v1253_v29 }
 0x443   :  { %v1827_v25 = vpop.eup %1826  ;;  %v1236_v37 = vadd.f32 %v1823_v21, %v1235_v34 }
 0x444   :  { %v1255_v30 = vadd.f32 %v1825_v24, %v1254_v28  ;;  %v1272_v53 = vmul.f32 %v1827_v25, %v1270_v39  ;;  %v1829_v47 = vpop.eup %1828  ;;  %vm1277_vm5 = vweird.f32 %v1827_v25 }
 0x445   :  { %v1240_v46 = vsel %vm1239_vm1, %v1823_v21, %v1236_v37  ;;  %vm1278_vm7 = vmor %vm1276_vm6, %vm1277_vm5 }
 0x446   :  { %v1245_v48 = vsel %vm1242_vm3, %v1244_v19, %v1240_v46  ;;  %v1259_v49 = vsel %vm1258_vm2, %v1825_v24, %v1255_v30  ;;  %v1273_v50 = vsub.f32 1.0, %v1272_v53 }
 0x447   :  { %v1264_v51 = vsel %vm1261_vm4, %v1263_v45, %v1259_v49  ;;  %v1287_v52 = vmul.f32 %v1829_v47, %v1245_v48 }
 0x448   :  { %v1286_v55 = vmul.f32 %v1264_v51, %v2968_v36  ;;  %v1274_v56 = vmul.f32 %v1827_v25, %v1273_v50 }
 0x44a   :  { %v3040_v18 = vadd.f32 %v1287_v52, %v1286_v55  ;;  %v1275_v61 = vadd.f32 %v1827_v25, %v1274_v56 }
 0x44c   :  { %1830 = vtanh.f32 %v3040_v18  ;;  %v1279_v12 = vsel %vm1278_vm7, %v1827_v25, %v1275_v61 }
 0x44d   :  { %v1284_v44 = vsel %vm1281_vm8, %v1283_v31, %v1279_v12  ;;  %v1612_v12 = vld [vmem:[#allocation6 + $0x68] sm:$0xff]  ;;  %v1611_v31 = vld [vmem:[#allocation6 + $0x60] sm:$0xff] }
 0x452   :  { %v1831_v10 = vpop.eup %1830 }
 0x453   :  { %v1290_v58 = vmul.f32 %v1831_v10, %v1284_v44  ;;  %v1610_v10 = vld [vmem:[#allocation6 + $0x58] sm:$0xff]  ;;  %v1609_v44 = vld [vmem:[#allocation6 + $0x50] sm:$0xff] }
 0x455   :  { %1314 = vmatmul.f32.vlgmr.msrb.gmra.mxu0 %v1290_v58  ;;  %1334 = vmatmul.f32.vlgmr.msra.gmra.mxu1 %v1290_v58 }
 0x456   :  { %1354 = vmatmul.f32.vlgmr.msra.gmra.mxu2 %v1290_v58  ;;  %1374 = vmatmul.f32.vlgmr.msra.gmra.mxu3 %v1290_v58  ;;  %v1608_v58 = vld [vmem:[#allocation6 + $0x48] sm:$0xff] }
 0x4d2   :  { %v1315_v36 = vpop.f32.mrf.mxu0  ;;  %v1335_v62 = vpop.f32.mrf.mxu1 }
 0x4d3   :  { %v1378_v59 = vadd.f32 %v1315_v36, %v3359_v60  ;;  %v1379_v7 = vadd.f32 %v1335_v62, %v3360_v0  ;;  %v1607_v36 = vld [vmem:[#allocation6 + $0x40] sm:$0xff]  ;;  %v1606_v62 = vld [vmem:[#allocation6 + $0x38] sm:$0xff]  ;;  %v1605_v60 = vld [vmem:[#allocation6 + $0x30] sm:$0xff] }
 0x4d5   :  { %v1715_v5 = vmul.f32 -1.442695, %v1378_v59  ;;  %v1716_v1 = vmul.f32 -1.442695, %v1379_v7  ;;  %v3363_v7 = vld [vmem:[#allocation39_spill] sm:$0xff] }
 0x4d7   :  { %1832 = vpow2.f32 %v1715_v5 }
 0x4d8   :  { %1834 = vpow2.f32 %v1716_v1  ;;  %v3364_v1 = vld [vmem:[#allocation62_spill] sm:$0xff] }
 0x4d9   :  { %v1375_v3 = vpop.f32.mrf.mxu3  ;;  %v1355_v13 = vpop.f32.mrf.mxu2 }
 0x4da   :  { %v1381_v54 = vadd.f32 %v1375_v3, %v3361_v4  ;;  %v1380_v26 = vadd.f32 %v1355_v13, %v3362_v35  ;;  %v1604_v4 = vld [vmem:[#allocation6 + $0x28] sm:$0xff] }
 0x4db   :  { %v1600_v13 = vld [vmem:[#allocation6 + $0x8] sm:$0xff] }
 0x4dc   :  { %v1717_v6 = vmul.f32 -1.442695, %v1381_v54 }
 0x4dd   :  { %v1833_v57 = vpop.eup %1832 }
 0x4de   :  { %v1835_v2 = vpop.eup %1834  ;;  %v1385_v63 = vadd.f32 1.0, %v1833_v57  ;;  %1836 = vpow2.f32 %v1717_v6  ;;  %v1603_v57 = vld [vmem:[#allocation6 + $0x20] sm:$0xff] }
 0x4df   :  { %v1404_v9 = vadd.f32 1.0, %v1835_v2  ;;  %v1602_v2 = vld [vmem:[#allocation6 + $0x18] sm:$0xff] }
 0x4e0   :  { %1838 = vrcp.f32 %v1385_v63  ;;  %v1397_v43 = vand.u32 2147483648, %v1385_v63  ;;  %v1395_v33 = vand.u32 2147483647, %v1385_v63  ;;  %vm1391_vm11 = vweird.f32 %v1385_v63 }
 0x4e1   :  { %1840 = vrcp.f32 %v1404_v9  ;;  %v1416_v27 = vand.u32 2147483648, %v1404_v9  ;;  %v1414_v42 = vand.u32 2147483647, %v1404_v9  ;;  %vm1410_vm12 = vweird.f32 %v1404_v9 }
 0x4e2   :  { %v1398_v40 = vor.u32 1.1754944e-38, %v1397_v43  ;;  %vm1396_vm15 = vcmp.eq.f32.partialorder %v1395_v33, 8.507059e+37 }
 0x4e3   :  { %v1417_v28 = vor.u32 1.1754944e-38, %v1416_v27  ;;  %vm1415_vm0 = vcmp.eq.f32.partialorder %v1414_v42, 8.507059e+37 }
 0x4e4   :  { %v1837_v14 = vpop.eup %1836 }
 0x4e5   :  { %v1424_v15 = vadd.f32 1.0, %v1837_v14  ;;  %v3365_v14 = vld [vmem:[#allocation64_spill] sm:$0xff] }
 0x4e6   :  { %v1839_v38 = vpop.eup %1838 }
 0x4e7   :  { %v1841_v16 = vpop.eup %1840  ;;  %v1387_v17 = vmul.f32 %v1839_v38, %v1385_v63  ;;  %1842 = vrcp.f32 %v1424_v15  ;;  %vm1392_vm9 = vweird.f32 %v1839_v38  ;;  %v1436_v50 = vand.u32 2147483648, %v1424_v15  ;;  %v1601_v63 = vld [vmem:[#allocation6 + $0x10] sm:$0xff] }
 0x4e8   :  { %v1406_v23 = vmul.f32 %v1841_v16, %v1404_v9  ;;  %1844 = vtanh.f32 %v1380_v26  ;;  %vm1411_vm10 = vweird.f32 %v1841_v16  ;;  %vm1393_vm13 = vmor %vm1391_vm11, %vm1392_vm9  ;;  %vm1430_vm2 = vweird.f32 %v1424_v15 }
 0x4e9   :  { %v1388_v39 = vsub.f32 1.0, %v1387_v17  ;;  %vm1412_vm14 = vmor %vm1410_vm12, %vm1411_vm10  ;;  %v1434_v51 = vand.u32 2147483647, %v1424_v15  ;;  %v1437_v55 = vor.u32 1.1754944e-38, %v1436_v50 }
 0x4ea   :  { %v1407_v21 = vsub.f32 1.0, %v1406_v23 }
 0x4eb   :  { %v1389_v24 = vmul.f32 %v1839_v38, %v1388_v39  ;;  %vm1435_vm4 = vcmp.eq.f32.partialorder %v1434_v51, 8.507059e+37 }
 0x4ec   :  { %v1408_v32 = vmul.f32 %v1841_v16, %v1407_v21 }
 0x4ed   :  { %v1843_v29 = vpop.eup %1842  ;;  %v1390_v22 = vadd.f32 %v1839_v38, %v1389_v24  ;;  %v3366_v24 = vld [vmem:[#allocation63_spill] sm:$0xff] }
 0x4ee   :  { %v1409_v34 = vadd.f32 %v1841_v16, %v1408_v32  ;;  %v1426_v41 = vmul.f32 %v1843_v29, %v1424_v15  ;;  %v1845_v25 = vpop.eup %1844  ;;  %vm1431_vm1 = vweird.f32 %v1843_v29 }
 0x4ef   :  { %v1394_v20 = vsel %vm1393_vm13, %v1839_v38, %v1390_v22  ;;  %vm1432_vm3 = vmor %vm1430_vm2, %vm1431_vm1  ;;  %v1599_v38 = vld [vmem:[#allocation6] sm:$0xff] }
 0x4f0   :  { %v1399_v37 = vsel %vm1396_vm15, %v1398_v40, %v1394_v20  ;;  %v1413_v19 = vsel %vm1412_vm14, %v1841_v16, %v1409_v34  ;;  %v1427_v30 = vsub.f32 1.0, %v1426_v41 }
 0x4f1   :  { %v1418_v53 = vsel %vm1415_vm0, %v1417_v28, %v1413_v19  ;;  %v1441_v45 = vmul.f32 %v1845_v25, %v1399_v37 }
 0x4f2   :  { %v1440_v46 = vmul.f32 %v1418_v53, %v3040_v18  ;;  %v1428_v47 = vmul.f32 %v1843_v29, %v1427_v30  ;;  %v1614_v18 = vld [vmem:[#allocation6 + $0x78] sm:$0xff] }
 0x4f3   :  { %1619 = vmatpush.msrb.mxu0 %v1614_v18 }
 0x4f4   :  { %v3048_v48 = vadd.f32 %v1441_v45, %v1440_v46  ;;  %v1429_v49 = vadd.f32 %v1843_v29, %v1428_v47 }
 0x4f5   :  { %1620 = vmatpush.msrb.mxu0 %v1613_v11 }
 0x4f6   :  { %1846 = vtanh.f32 %v3048_v48  ;;  %v1433_v52 = vsel %vm1432_vm3, %v1843_v29, %v1429_v49 }
 0x4f7   :  { %v1438_v61 = vsel %vm1435_vm4, %v1437_v55, %v1433_v52  ;;  %1621 = vmatpush.msrb.mxu0 %v1612_v12 }
 0x4f9   :  { %1622 = vmatpush.msrb.mxu0 %v1611_v31 }
 0x4fb   :  { %1623 = vmatpush.msrb.mxu0 %v1610_v10 }
 0x4fc   :  { %v1847_v56 = vpop.eup %1846 }
 0x4fd   :  { %v1444_v8 = vmul.f32 %v1847_v56, %v1438_v61  ;;  %1624 = vmatpush.msrb.mxu0 %v1609_v44 }
 0x4ff   :  { %1468 = vmatmul.f32.vlgmr.msra.gmra.mxu0 %v1444_v8  ;;  %1488 = vmatmul.f32.vlgmr.msrb.gmra.mxu1 %v1444_v8 }
 0x500   :  { %1508 = vmatmul.f32.vlgmr.msrb.gmra.mxu2 %v1444_v8  ;;  %1528 = vmatmul.f32.vlgmr.msrb.gmra.mxu3 %v1444_v8 }
 0x501   :  { %1625 = vmatpush.msrb.mxu0 %v1608_v58 }
 0x503   :  { %1626 = vmatpush.msrb.mxu0 %v1607_v36 }
 0x505   :  { %1627 = vmatpush.msrb.mxu0 %v1606_v62 }
 0x507   :  { %1628 = vmatpush.msrb.mxu0 %v1605_v60 }
 0x509   :  { %1629 = vmatpush.msrb.mxu0 %v1604_v4 }
 0x50b   :  { %1630 = vmatpush.msrb.mxu0 %v1603_v57 }
 0x50d   :  { %1631 = vmatpush.msrb.mxu0 %v1602_v2 }
 0x50f   :  { %1632 = vmatpush.msrb.mxu0 %v1601_v63 }
 0x511   :  { %1633 = vmatpush.msrb.mxu0 %v1600_v13 }
 0x513   :  { %1634 = vmatpush.msrb.mxu0 %v1599_v38 }
 0x57c   :  { %v1469_v59 = vpop.f32.mrf.mxu0  ;;  %v1489_v0 = vpop.f32.mrf.mxu1 }
 0x57d   :  { %v1532_v5 = vadd.f32 %v1469_v59, %v3363_v7  ;;  %v1533_v3 = vadd.f32 %v1489_v0, %v3364_v1 }
 0x57f   :  { %v1718_v54 = vmul.f32 -1.442695, %v1532_v5  ;;  %v1719_v6 = vmul.f32 -1.442695, %v1533_v3 }
 0x581   :  { %1848 = vpow2.f32 %v1718_v54 }
 0x582   :  { %1850 = vpow2.f32 %v1719_v6 }
 0x583   :  { %v1529_v9 = vpop.f32.mrf.mxu3  ;;  %v1509_v39 = vpop.f32.mrf.mxu2 }
 0x584   :  { %v1535_v15 = vadd.f32 %v1529_v9, %v3365_v14  ;;  %v1534_v33 = vadd.f32 %v1509_v39, %v3366_v24 }
 0x586   :  { %v1720_v35 = vmul.f32 -1.442695, %v1535_v15 }
 0x587   :  { %v1849_v26 = vpop.eup %1848 }
 0x588   :  { %v1851_v16 = vpop.eup %1850  ;;  %v1539_v17 = vadd.f32 1.0, %v1849_v26  ;;  %1852 = vpow2.f32 %v1720_v35 }
 0x589   :  { %v1558_v23 = vadd.f32 1.0, %v1851_v16 }
 0x58a   :  { %1854 = vrcp.f32 %v1539_v17  ;;  %v1551_v34 = vand.u32 2147483648, %v1539_v17  ;;  %v1549_v20 = vand.u32 2147483647, %v1539_v17  ;;  %vm1545_vm7 = vweird.f32 %v1539_v17 }
 0x58b   :  { %1856 = vrcp.f32 %v1558_v23  ;;  %v1570_v41 = vand.u32 2147483648, %v1558_v23  ;;  %v1568_v37 = vand.u32 2147483647, %v1558_v23  ;;  %vm1564_vm8 = vweird.f32 %v1558_v23 }
 0x58c   :  { %v1552_v53 = vor.u32 1.1754944e-38, %v1551_v34  ;;  %vm1550_vm11 = vcmp.eq.f32.partialorder %v1549_v20, 8.507059e+37 }
 0x58d   :  { %v1571_v47 = vor.u32 1.1754944e-38, %v1570_v41  ;;  %vm1569_vm12 = vcmp.eq.f32.partialorder %v1568_v37, 8.507059e+37 }
 0x58e   :  { %v1853_v21 = vpop.eup %1852 }
 0x58f   :  { %v1578_v43 = vadd.f32 1.0, %v1853_v21 }
 0x590   :  { %v1855_v27 = vpop.eup %1854 }
 0x591   :  { %v1857_v32 = vpop.eup %1856  ;;  %v1541_v42 = vmul.f32 %v1855_v27, %v1539_v17  ;;  %1858 = vrcp.f32 %v1578_v43  ;;  %vm1546_vm5 = vweird.f32 %v1855_v27  ;;  %v1590_v31 = vand.u32 2147483648, %v1578_v43 }
 0x592   :  { %v1560_v29 = vmul.f32 %v1857_v32, %v1558_v23  ;;  %1860 = vtanh.f32 %v1534_v33  ;;  %vm1565_vm6 = vweird.f32 %v1857_v32  ;;  %vm1547_vm9 = vmor %vm1545_vm7, %vm1546_vm5  ;;  %vm1584_vm14 = vweird.f32 %v1578_v43 }
 0x593   :  { %v1542_v22 = vsub.f32 1.0, %v1541_v42  ;;  %vm1566_vm10 = vmor %vm1564_vm8, %vm1565_vm6  ;;  %v1588_v10 = vand.u32 2147483647, %v1578_v43  ;;  %v1591_v58 = vor.u32 1.1754944e-38, %v1590_v31 }
 0x594   :  { %v1561_v40 = vsub.f32 1.0, %v1560_v29 }
 0x595   :  { %v1543_v28 = vmul.f32 %v1855_v27, %v1542_v22  ;;  %vm1589_vm0 = vcmp.eq.f32.partialorder %v1588_v10, 8.507059e+37 }
 0x596   :  { %v1562_v25 = vmul.f32 %v1857_v32, %v1561_v40 }
 0x597   :  { %v1859_v19 = vpop.eup %1858  ;;  %v1544_v30 = vadd.f32 %v1855_v27, %v1543_v28 }
 0x598   :  { %v1563_v45 = vadd.f32 %v1857_v32, %v1562_v25  ;;  %v1580_v46 = vmul.f32 %v1859_v19, %v1578_v43  ;;  %v1861_v50 = vpop.eup %1860  ;;  %vm1585_vm13 = vweird.f32 %v1859_v19 }
 0x599   :  { %v1548_v49 = vsel %vm1547_vm9, %v1855_v27, %v1544_v30  ;;  %vm1586_vm15 = vmor %vm1584_vm14, %vm1585_vm13 }
 0x59a   :  { %v1553_v51 = vsel %vm1550_vm11, %v1552_v53, %v1548_v49  ;;  %v1567_v52 = vsel %vm1566_vm10, %v1857_v32, %v1563_v45  ;;  %v1581_v55 = vsub.f32 1.0, %v1580_v46 }
 0x59b   :  { %v1572_v56 = vsel %vm1569_vm12, %v1571_v47, %v1567_v52  ;;  %v1595_v61 = vmul.f32 %v1861_v50, %v1553_v51 }
 0x59c   :  { %v1594_v8 = vmul.f32 %v1572_v56, %v3048_v48  ;;  %v1582_v18 = vmul.f32 %v1859_v19, %v1581_v55  ;;  %v1735_v48 = vld [vmem:[%s3067_s5] ss:$0 sm:$0xff] }
 0x59e   :  { %v1596_v11 = vadd.f32 %v1595_v61, %v1594_v8  ;;  %v1583_v12 = vadd.f32 %v1859_v19, %v1582_v18 }
 0x5a0   :  { %1862 = vtanh.f32 %v1596_v11  ;;  %v1587_v44 = vsel %vm1586_vm15, %v1859_v19, %v1583_v12 }
 0x5a1   :  { %v1592_v62 = vsel %vm1589_vm0, %v1591_v58, %v1587_v44 }
 0x5a6   :  { %v1863_v36 = vpop.eup %1862 }
 0x5a7   :  { %v1598_v60 = vmul.f32 %v1863_v36, %v1592_v62 }
 0x5a9   :  { %1635 = vmatmul.f32.vlgmr.msrb.gmra.mxu0 %v1598_v60 }
 0x626   :  { %v1636_v59 = vpop.f32.mrf.mxu0 }
 0x627   :  { %v1637_v0 = vadd.f32 %v1735_v48, %v1636_v59 }
 0x629   :  { %1639 = vst [vmem:[#allocation8] sm:$0xff] %v1637_v0 }
 0x62a   :  { %1650 = dma.vmem_to_hbm [thread:$0]  %s1646_s17, 128, %s1648_s20, [#allocation5]  }
 0x62b   :  { %2004 = dma.done.wait [#allocation5], 128  }
 0x62c   :  { %2005 = vsyncadd [#allocation5], 4294967168 }
 0x62d   :  { %1655 = vsyncpa [#allocation4], 1 }
 0x62e   :  { %1656 = vsyncpa [#allocation7], 1 }
 0x62f   :  { %1657 = vsyncpa [#allocation5], 1 }

</bundles_post_ra>
